<compile_context>
chip_gen: v5e
topology: v5e:2x2
jax: 0.10.0
libtpu: 0.0.40
codegen_flags: <defaults>
</compile_context>

<pallas_src>
import functools
import math

import jax
import jax.numpy as jnp
from jax.experimental import pallas as pl
from jax.experimental.pallas import tpu as pltpu


def _layernorm(x, alpha, bias, eps):
    # Matches NormLayer: alpha*(x-mean)/(std+eps)+bias with torch's unbiased std.
    d = x.shape[-1]
    mean = jnp.mean(x, axis=-1, keepdims=True)
    diff = x - mean
    var = jnp.sum(diff * diff, axis=-1, keepdims=True) * (1.0 / (d - 1))
    inv = pl.reciprocal(jnp.sqrt(var) + eps, approx=True)
    return alpha * (diff * inv) + bias


def encoder_layer_kernel(xq_ref, xs_ref, mb_ref,
                         wq_ref, bq_ref, wkv_ref, bkv_ref, woh_ref, bo_ref,
                         a1_ref, n1b_ref, a2_ref, n2b_ref,
                         w1_ref, fb1_ref, w2_ref, fb2_ref,
                         out_ref, *, heads, eps):
    f32 = jnp.float32
    wdt = wq_ref.dtype                     # matmul operand dtype (bf16 by default)

    xq = xq_ref[0].astype(f32)             # (TQ, D)  query tile of the sequence
    xs = xs_ref[0].astype(f32)             # (S,  D)  full sequence (K/V source)
    mbias = mb_ref[0]                      # (1, S)   additive mask bias (0 / -1e9)
    TQ, D = xq.shape
    S = xs.shape[0]
    d_k = D // heads
    scale = 1.0 / math.sqrt(d_k)

    # ---- sublayer 1: x = x + attn(norm_1(x)) -------------------------------
    a1 = a1_ref[0]
    n1b = n1b_ref[0]
    xq2 = _layernorm(xq, a1, n1b, eps)     # (TQ, D)
    xs2 = _layernorm(xs, a1, n1b, eps)     # (S,  D)

    q = jnp.dot(xq2.astype(wdt), wq_ref[...], preferred_element_type=f32) + bq_ref[0]
    q = q * scale                          # fold 1/sqrt(d_k) into q once
    kv = jnp.dot(xs2.astype(wdt), wkv_ref[...], preferred_element_type=f32) + bkv_ref[0]
    k = kv[:, :D]
    v = kv[:, D:]

    # Head-batched attention: stack the per-head lane slices along a new
    # leading (batch) axis and contract all heads in single einsums.
    qh = jnp.stack([q[:, h * d_k:(h + 1) * d_k] for h in range(heads)], axis=0)  # (H,TQ,dk)
    kh = jnp.stack([k[:, h * d_k:(h + 1) * d_k] for h in range(heads)], axis=0)  # (H,S,dk)
    vh = jnp.stack([v[:, h * d_k:(h + 1) * d_k] for h in range(heads)], axis=0)  # (H,S,dk)

    scores = jnp.einsum("hqd,hkd->hqk", qh, kh,
                        preferred_element_type=f32)                              # (H,TQ,S)
    scores = scores + mbias                                                       # additive mask
    m = jnp.max(scores, axis=-1, keepdims=True)
    e = jnp.exp(scores - m)
    p = e * pl.reciprocal(jnp.sum(e, axis=-1, keepdims=True), approx=True)

    o = jnp.einsum("hqk,hkd->hqd", p, vh, preferred_element_type=f32)             # (H,TQ,dk)

    # Fused "concat + output projection": sum_h  o_h @ Wo_h   (Wo head-major).
    proj = jnp.einsum("hqc,hcd->hqd", o.astype(wdt), woh_ref[...],
                      preferred_element_type=f32)                                 # (H,TQ,D)
    attn_out = jnp.sum(proj, axis=0) + bo_ref[0]                                  # (TQ,D)
    x = xq + attn_out

    # ---- sublayer 2: x = x + ff(norm_2(x)) ---------------------------------
    # TODO(synk): original FeedForward.forward has no return statement (returns
    # None, a bug); implemented the intended linear2(relu(linear1(x))).
    x2 = _layernorm(x, a2_ref[0], n2b_ref[0], eps)
    h1 = jnp.dot(x2.astype(wdt), w1_ref[...], preferred_element_type=f32) + fb1_ref[0]
    h1 = jnp.maximum(h1, 0.0)
    ff = jnp.dot(h1.astype(wdt), w2_ref[...], preferred_element_type=f32) + fb2_ref[0]
    x = x + ff

    out_ref[0] = x.astype(out_ref.dtype)


def encoder_layer(x, mask, params, *, heads, eps=1e-6, tq=128,
                  param_dtype=jnp.bfloat16):
    B, S, D = x.shape
    d_k = D // heads
    tq = min(tq, S)
    assert S % tq == 0, "sequence length must be divisible by the query tile"

    # Hoisted additive mask bias: removes per-head compare+select in the kernel.
    mask_bias = jnp.where(mask == 0, -1e9, 0.0).astype(jnp.float32)

    cast = lambda w: w.astype(param_dtype)
    wkv = jnp.concatenate([params["wk"], params["wv"]], axis=1)    # fused K|V proj
    bkv = jnp.concatenate([params["bk"], params["bv"]], axis=1)
    wo_h = params["wo"].reshape(heads, d_k, D)                     # head-major Wo
    weights = (cast(params["wq"]), params["bq"],
               cast(wkv), bkv,
               cast(wo_h), params["bo"],
               params["a1"], params["n1b"], params["a2"], params["n2b"],
               cast(params["w1"]), params["fb1"],
               cast(params["w2"]), params["fb2"])

    kernel = functools.partial(encoder_layer_kernel, heads=heads, eps=eps)

    def build(single_buffer_weights):
        def wspec(arr):
            nd = arr.ndim
            idx = (lambda n: (lambda b, qi: (0,) * n))(nd)
            if single_buffer_weights:
                # Weights are grid-invariant: one VMEM copy, no double-buffering.
                return pl.BlockSpec(arr.shape, idx, pipeline_mode=pl.Buffered(1))
            return pl.BlockSpec(arr.shape, idx)

        in_specs = ([pl.BlockSpec((1, tq, D), lambda b, qi: (b, qi, 0)),   # query tile
                     pl.BlockSpec((1, S, D), lambda b, qi: (b, 0, 0)),     # full seq (K/V)
                     pl.BlockSpec((1, 1, S), lambda b, qi: (b, 0, 0))]     # mask bias
                    + [wspec(w) for w in weights])

        return pl.pallas_call(
            kernel,
            out_shape=jax.ShapeDtypeStruct((B, S, D), x.dtype),
            grid_spec=pltpu.PrefetchScalarGridSpec(
                num_scalar_prefetch=0,
                grid=(B, S // tq),
                in_specs=in_specs,
                out_specs=pl.BlockSpec((1, tq, D), lambda b, qi: (b, qi, 0)),
            ),
            compiler_params=pltpu.CompilerParams(
                dimension_semantics=("parallel", "parallel"),
                vmem_limit_bytes=48 * 1024 * 1024,
            ),
        )

    try:
        return jax.block_until_ready(build(True)(x, x, mask_bias, *weights))
    except Exception:
        # Fallback if this JAX version rejects single-buffered (Buffered(1)) specs.
        return build(False)(x, x, mask_bias, *weights)


def reference(x, mask, p, *, heads, eps=1e-6, param_dtype=jnp.bfloat16):
    """Pure-JAX reference mirroring the kernel's mixed precision (bf16 matmul
    operands, f32 accumulation) so the comparison stays tight."""
    wdt = param_dtype

    def ln(t, a, b):
        d = t.shape[-1]
        mean = t.mean(-1, keepdims=True)
        std = jnp.sqrt(((t - mean) ** 2).sum(-1, keepdims=True) / (d - 1))
        return a * (t - mean) / (std + eps) + b

    def mm(a, w):
        return jnp.dot(a.astype(wdt), w.astype(wdt),
                       preferred_element_type=jnp.float32)

    B, S, D = x.shape
    d_k = D // heads
    x2 = ln(x, p["a1"][0], p["n1b"][0])
    q = mm(x2, p["wq"]) + p["bq"][0]
    k = mm(x2, p["wk"]) + p["bk"][0]
    v = mm(x2, p["wv"]) + p["bv"][0]
    qh = q.reshape(B, S, heads, d_k).transpose(0, 2, 1, 3)
    kh = k.reshape(B, S, heads, d_k).transpose(0, 2, 1, 3)
    vh = v.reshape(B, S, heads, d_k).transpose(0, 2, 1, 3)
    scores = jnp.einsum("bhqd,bhkd->bhqk", qh, kh) / math.sqrt(d_k)
    scores = jnp.where(mask[:, None] == 0, -1e9, scores)
    attn = jax.nn.softmax(scores, axis=-1)
    o = jnp.einsum("bhqk,bhkd->bhqd", attn, vh)
    concat = o.transpose(0, 2, 1, 3).reshape(B, S, D)
    x = x + mm(concat, p["wo"]) + p["bo"][0]
    x2 = ln(x, p["a2"][0], p["n2b"][0])
    h1 = jnp.maximum(mm(x2, p["w1"]) + p["fb1"][0], 0.0)
    ff = mm(h1, p["w2"]) + p["fb2"][0]
    return x + ff


def init_params(key, d_model, heads):
    d_ff = d_model * 4
    ks = jax.random.split(key, 12)
    s = 0.1

    def lin(kw, kb, din, dout):
        w = s * jax.random.normal(kw, (din, dout), jnp.float32)      # (in, out)
        b = s * jax.random.normal(kb, (1, dout), jnp.float32)
        return w, b

    wq, bq = lin(ks[0], ks[1], d_model, d_model)
    wk, bk = lin(ks[2], ks[3], d_model, d_model)
    wv, bv = lin(ks[4], ks[5], d_model, d_model)
    wo, bo = lin(ks[6], ks[7], d_model, d_model)
    w1, fb1 = lin(ks[8], ks[9], d_model, d_ff)
    w2, fb2 = lin(ks[10], ks[11], d_ff, d_model)
    return dict(
        wq=wq, bq=bq, wk=wk, bk=bk, wv=wv, bv=bv, wo=wo, bo=bo,
        a1=jnp.ones((1, d_model), jnp.float32), n1b=jnp.zeros((1, d_model), jnp.float32),
        a2=jnp.ones((1, d_model), jnp.float32), n2b=jnp.zeros((1, d_model), jnp.float32),
        w1=w1, fb1=fb1, w2=w2, fb2=fb2,
    )


if __name__ == "__main__":
    B, S, D, HEADS = 2, 8, 32, 4
    key = jax.random.PRNGKey(0)
    kx, kp = jax.random.split(key, 2)

    x = jax.random.normal(kx, (B, S, D), jnp.float32)
    # Padding mask (B, 1, S): keep most positions, mask the last one of batch 1.
    mask = jnp.ones((B, 1, S), jnp.int32)
    mask = mask.at[1, 0, S - 1].set(0)

    params = init_params(kp, D, HEADS)

    out = encoder_layer(x, mask, params, heads=HEADS)
    out = jax.block_until_ready(out)

    ref = reference(x, mask, params, heads=HEADS)
    assert out.shape == (B, S, D)
    err = float(jnp.max(jnp.abs(out - ref)))
    # Tolerance accounts for approx-EUP reciprocals in softmax/layer-norm.
    assert jnp.allclose(out, ref, rtol=1e-2, atol=1e-2), f"mismatch vs reference: {err}"
    print("KERNEL_OK")
</pallas_src>

<mosaic_0001>
module attributes {stable_mosaic.version = 11 : i64} {
  func.func @encoder_layer_kernel(%arg0: i32, %arg1: i32, %arg2: memref<1x8x32xf32, #tpu.memory_space<vmem>>, %arg3: memref<1x8x32xf32, #tpu.memory_space<vmem>>, %arg4: memref<1x1x8xf32, #tpu.memory_space<vmem>>, %arg5: memref<32x32xbf16, #tpu.memory_space<vmem>>, %arg6: memref<1x32xf32, #tpu.memory_space<vmem>>, %arg7: memref<32x64xbf16, #tpu.memory_space<vmem>>, %arg8: memref<1x64xf32, #tpu.memory_space<vmem>>, %arg9: memref<4x8x32xbf16, #tpu.memory_space<vmem>>, %arg10: memref<1x32xf32, #tpu.memory_space<vmem>>, %arg11: memref<1x32xf32, #tpu.memory_space<vmem>>, %arg12: memref<1x32xf32, #tpu.memory_space<vmem>>, %arg13: memref<1x32xf32, #tpu.memory_space<vmem>>, %arg14: memref<1x32xf32, #tpu.memory_space<vmem>>, %arg15: memref<32x128xbf16, #tpu.memory_space<vmem>>, %arg16: memref<1x128xf32, #tpu.memory_space<vmem>>, %arg17: memref<128x32xbf16, #tpu.memory_space<vmem>>, %arg18: memref<1x32xf32, #tpu.memory_space<vmem>>, %arg19: memref<1x8x32xf32, #tpu.memory_space<vmem>>) attributes {dimension_semantics = [#tpu.dimension_semantics<parallel>, #tpu.dimension_semantics<parallel>], iteration_bounds = array<i64: 2, 1>, scalar_prefetch = 0 : i64, scratch_operands = 0 : i64, tpu.core_type = #tpu.core_type<tc>, window_params = [{transform_indices = @transform_0, window_bounds = array<i64: 1, 8, 32>}, {transform_indices = @transform_1, window_bounds = array<i64: 1, 8, 32>}, {transform_indices = @transform_2, window_bounds = array<i64: 1, 1, 8>}, {pipeline_mode = #tpu.pipeline_mode<synchronous>, transform_indices = @transform_3, window_bounds = array<i64: 32, 32>}, {pipeline_mode = #tpu.pipeline_mode<synchronous>, transform_indices = @transform_4, window_bounds = array<i64: 1, 32>}, {pipeline_mode = #tpu.pipeline_mode<synchronous>, transform_indices = @transform_5, window_bounds = array<i64: 32, 64>}, {pipeline_mode = #tpu.pipeline_mode<synchronous>, transform_indices = @transform_6, window_bounds = array<i64: 1, 64>}, {pipeline_mode = #tpu.pipeline_mode<synchronous>, transform_indices = @transform_7, window_bounds = array<i64: 4, 8, 32>}, {pipeline_mode = #tpu.pipeline_mode<synchronous>, transform_indices = @transform_8, window_bounds = array<i64: 1, 32>}, {pipeline_mode = #tpu.pipeline_mode<synchronous>, transform_indices = @transform_9, window_bounds = array<i64: 1, 32>}, {pipeline_mode = #tpu.pipeline_mode<synchronous>, transform_indices = @transform_10, window_bounds = array<i64: 1, 32>}, {pipeline_mode = #tpu.pipeline_mode<synchronous>, transform_indices = @transform_11, window_bounds = array<i64: 1, 32>}, {pipeline_mode = #tpu.pipeline_mode<synchronous>, transform_indices = @transform_12, window_bounds = array<i64: 1, 32>}, {pipeline_mode = #tpu.pipeline_mode<synchronous>, transform_indices = @transform_13, window_bounds = array<i64: 32, 128>}, {pipeline_mode = #tpu.pipeline_mode<synchronous>, transform_indices = @transform_14, window_bounds = array<i64: 1, 128>}, {pipeline_mode = #tpu.pipeline_mode<synchronous>, transform_indices = @transform_15, window_bounds = array<i64: 128, 32>}, {pipeline_mode = #tpu.pipeline_mode<synchronous>, transform_indices = @transform_16, window_bounds = array<i64: 1, 32>}, {transform_indices = @transform_17, window_bounds = array<i64: 1, 8, 32>}]} {
    %c0 = arith.constant 0 : index
    %c0_0 = arith.constant 0 : index
    %c0_1 = arith.constant 0 : index
    %0 = vector.load %arg2[%c0, %c0_0, %c0_1] : memref<1x8x32xf32, #tpu.memory_space<vmem>>, vector<1x8x32xf32>
    %1 = vector.shape_cast %0 : vector<1x8x32xf32> to vector<8x32xf32>
    %c0_2 = arith.constant 0 : index
    %c0_3 = arith.constant 0 : index
    %c0_4 = arith.constant 0 : index
    %2 = vector.load %arg3[%c0_2, %c0_3, %c0_4] : memref<1x8x32xf32, #tpu.memory_space<vmem>>, vector<1x8x32xf32>
    %3 = vector.shape_cast %2 : vector<1x8x32xf32> to vector<8x32xf32>
    %c0_5 = arith.constant 0 : index
    %c0_6 = arith.constant 0 : index
    %c0_7 = arith.constant 0 : index
    %4 = vector.load %arg4[%c0_5, %c0_6, %c0_7] : memref<1x1x8xf32, #tpu.memory_space<vmem>>, vector<1x1x8xf32>
    %5 = vector.shape_cast %4 : vector<1x1x8xf32> to vector<1x8xf32>
    %c0_8 = arith.constant 0 : index
    %c0_9 = arith.constant 0 : index
    %6 = vector.load %arg11[%c0_8, %c0_9] : memref<1x32xf32, #tpu.memory_space<vmem>>, vector<1x32xf32>
    %7 = vector.shape_cast %6 : vector<1x32xf32> to vector<32xf32>
    %c0_10 = arith.constant 0 : index
    %c0_11 = arith.constant 0 : index
    %8 = vector.load %arg12[%c0_10, %c0_11] : memref<1x32xf32, #tpu.memory_space<vmem>>, vector<1x32xf32>
    %9 = vector.shape_cast %8 : vector<1x32xf32> to vector<32xf32>
    %cst = arith.constant dense<0.000000e+00> : vector<8xf32>
    %10 = vector.multi_reduction <add>, %1, %cst [1] : vector<8x32xf32> to vector<8xf32>
    %11 = vector.shape_cast %10 : vector<8xf32> to vector<8x1xf32>
    %cst_12 = arith.constant 3.200000e+01 : f32
    %12 = vector.broadcast %cst_12 : f32 to vector<8x1xf32>
    %13 = arith.divf %11, %12 : vector<8x1xf32>
    %14 = vector.broadcast %13 : vector<8x1xf32> to vector<8x32xf32>
    %15 = arith.subf %1, %14 : vector<8x32xf32>
    %16 = arith.mulf %15, %15 : vector<8x32xf32>
    %cst_13 = arith.constant dense<0.000000e+00> : vector<8xf32>
    %17 = vector.multi_reduction <add>, %16, %cst_13 [1] : vector<8x32xf32> to vector<8xf32>
    %18 = vector.shape_cast %17 : vector<8xf32> to vector<8x1xf32>
    %cst_14 = arith.constant 0.0322580636 : f32
    %19 = vector.broadcast %cst_14 : f32 to vector<8x1xf32>
    %20 = arith.mulf %18, %19 : vector<8x1xf32>
    %21 = math.sqrt %20 : vector<8x1xf32>
    %cst_15 = arith.constant 9.99999997E-7 : f32
    %22 = vector.broadcast %cst_15 : f32 to vector<8x1xf32>
    %23 = arith.addf %21, %22 : vector<8x1xf32>
    %24 = tpu.reciprocal %23 {approx = true} : vector<8x1xf32> -> vector<8x1xf32>
    %25 = vector.broadcast %24 : vector<8x1xf32> to vector<8x32xf32>
    %26 = arith.mulf %15, %25 : vector<8x32xf32>
    %27 = vector.shape_cast %7 : vector<32xf32> to vector<1x32xf32>
    %28 = vector.broadcast %27 : vector<1x32xf32> to vector<8x32xf32>
    %29 = arith.mulf %28, %26 : vector<8x32xf32>
    %30 = vector.shape_cast %9 : vector<32xf32> to vector<1x32xf32>
    %31 = vector.broadcast %30 : vector<1x32xf32> to vector<8x32xf32>
    %32 = arith.addf %29, %31 : vector<8x32xf32>
    %cst_16 = arith.constant dense<0.000000e+00> : vector<8xf32>
    %33 = vector.multi_reduction <add>, %3, %cst_16 [1] : vector<8x32xf32> to vector<8xf32>
    %34 = vector.shape_cast %33 : vector<8xf32> to vector<8x1xf32>
    %cst_17 = arith.constant 3.200000e+01 : f32
    %35 = vector.broadcast %cst_17 : f32 to vector<8x1xf32>
    %36 = arith.divf %34, %35 : vector<8x1xf32>
    %37 = vector.broadcast %36 : vector<8x1xf32> to vector<8x32xf32>
    %38 = arith.subf %3, %37 : vector<8x32xf32>
    %39 = arith.mulf %38, %38 : vector<8x32xf32>
    %cst_18 = arith.constant dense<0.000000e+00> : vector<8xf32>
    %40 = vector.multi_reduction <add>, %39, %cst_18 [1] : vector<8x32xf32> to vector<8xf32>
    %41 = vector.shape_cast %40 : vector<8xf32> to vector<8x1xf32>
    %cst_19 = arith.constant 0.0322580636 : f32
    %42 = vector.broadcast %cst_19 : f32 to vector<8x1xf32>
    %43 = arith.mulf %41, %42 : vector<8x1xf32>
    %44 = math.sqrt %43 : vector<8x1xf32>
    %cst_20 = arith.constant 9.99999997E-7 : f32
    %45 = vector.broadcast %cst_20 : f32 to vector<8x1xf32>
    %46 = arith.addf %44, %45 : vector<8x1xf32>
    %47 = tpu.reciprocal %46 {approx = true} : vector<8x1xf32> -> vector<8x1xf32>
    %48 = vector.broadcast %47 : vector<8x1xf32> to vector<8x32xf32>
    %49 = arith.mulf %38, %48 : vector<8x32xf32>
    %50 = vector.shape_cast %7 : vector<32xf32> to vector<1x32xf32>
    %51 = vector.broadcast %50 : vector<1x32xf32> to vector<8x32xf32>
    %52 = arith.mulf %51, %49 : vector<8x32xf32>
    %53 = vector.shape_cast %9 : vector<32xf32> to vector<1x32xf32>
    %54 = vector.broadcast %53 : vector<1x32xf32> to vector<8x32xf32>
    %55 = arith.addf %52, %54 : vector<8x32xf32>
    %56 = arith.truncf %32 : vector<8x32xf32> to vector<8x32xbf16>
    %c0_21 = arith.constant 0 : index
    %c0_22 = arith.constant 0 : index
    %57 = vector.load %arg5[%c0_21, %c0_22] : memref<32x32xbf16, #tpu.memory_space<vmem>>, vector<32x32xbf16>
    %cst_23 = arith.constant dense<0.000000e+00> : vector<8x32xf32>
    %58 = tpu.matmul %56, %57, %cst_23 {dimension_numbers = #tpu.dot_dimension_numbers<[1], [0], [0], [1], [0, 0, 1, 1], [], []>} : vector<8x32xbf16>, vector<32x32xbf16>, vector<8x32xf32> -> vector<8x32xf32>
    %c0_24 = arith.constant 0 : index
    %c0_25 = arith.constant 0 : index
    %59 = vector.load %arg6[%c0_24, %c0_25] : memref<1x32xf32, #tpu.memory_space<vmem>>, vector<1x32xf32>
    %60 = vector.shape_cast %59 : vector<1x32xf32> to vector<32xf32>
    %61 = vector.shape_cast %60 : vector<32xf32> to vector<1x32xf32>
    %62 = vector.broadcast %61 : vector<1x32xf32> to vector<8x32xf32>
    %63 = arith.addf %58, %62 : vector<8x32xf32>
    %cst_26 = arith.constant 0.353553385 : f32
    %64 = vector.broadcast %cst_26 : f32 to vector<8x32xf32>
    %65 = arith.mulf %63, %64 : vector<8x32xf32>
    %66 = arith.truncf %55 : vector<8x32xf32> to vector<8x32xbf16>
    %c0_27 = arith.constant 0 : index
    %c0_28 = arith.constant 0 : index
    %67 = vector.load %arg7[%c0_27, %c0_28] : memref<32x64xbf16, #tpu.memory_space<vmem>>, vector<32x64xbf16>
    %cst_29 = arith.constant dense<0.000000e+00> : vector<8x64xf32>
    %68 = tpu.matmul %66, %67, %cst_29 {dimension_numbers = #tpu.dot_dimension_numbers<[1], [0], [0], [1], [0, 0, 1, 1], [], []>} : vector<8x32xbf16>, vector<32x64xbf16>, vector<8x64xf32> -> vector<8x64xf32>
    %c0_30 = arith.constant 0 : index
    %c0_31 = arith.constant 0 : index
    %69 = vector.load %arg8[%c0_30, %c0_31] : memref<1x64xf32, #tpu.memory_space<vmem>>, vector<1x64xf32>
    %70 = vector.shape_cast %69 : vector<1x64xf32> to vector<64xf32>
    %71 = vector.shape_cast %70 : vector<64xf32> to vector<1x64xf32>
    %72 = vector.broadcast %71 : vector<1x64xf32> to vector<8x64xf32>
    %73 = arith.addf %68, %72 : vector<8x64xf32>
    %74 = vector.extract_strided_slice %73 {offsets = [0, 0], sizes = [8, 32], strides = [1, 1]} : vector<8x64xf32> to vector<8x32xf32>
    %75 = vector.extract_strided_slice %73 {offsets = [0, 32], sizes = [8, 32], strides = [1, 1]} : vector<8x64xf32> to vector<8x32xf32>
    %76 = vector.extract_strided_slice %65 {offsets = [0, 0], sizes = [8, 8], strides = [1, 1]} : vector<8x32xf32> to vector<8x8xf32>
    %77 = vector.extract_strided_slice %65 {offsets = [0, 8], sizes = [8, 8], strides = [1, 1]} : vector<8x32xf32> to vector<8x8xf32>
    %78 = vector.extract_strided_slice %65 {offsets = [0, 16], sizes = [8, 8], strides = [1, 1]} : vector<8x32xf32> to vector<8x8xf32>
    %79 = vector.extract_strided_slice %65 {offsets = [0, 24], sizes = [8, 8], strides = [1, 1]} : vector<8x32xf32> to vector<8x8xf32>
    %80 = vector.shape_cast %76 : vector<8x8xf32> to vector<1x8x8xf32>
    %81 = vector.shape_cast %77 : vector<8x8xf32> to vector<1x8x8xf32>
    %82 = vector.shape_cast %78 : vector<8x8xf32> to vector<1x8x8xf32>
    %83 = vector.shape_cast %79 : vector<8x8xf32> to vector<1x8x8xf32>
    %84 = tpu.concatenate %80, %81, %82, %83 in 0 : vector<1x8x8xf32>, vector<1x8x8xf32>, vector<1x8x8xf32>, vector<1x8x8xf32> -> vector<4x8x8xf32>
    %85 = vector.extract_strided_slice %74 {offsets = [0, 0], sizes = [8, 8], strides = [1, 1]} : vector<8x32xf32> to vector<8x8xf32>
    %86 = vector.extract_strided_slice %74 {offsets = [0, 8], sizes = [8, 8], strides = [1, 1]} : vector<8x32xf32> to vector<8x8xf32>
    %87 = vector.extract_strided_slice %74 {offsets = [0, 16], sizes = [8, 8], strides = [1, 1]} : vector<8x32xf32> to vector<8x8xf32>
    %88 = vector.extract_strided_slice %74 {offsets = [0, 24], sizes = [8, 8], strides = [1, 1]} : vector<8x32xf32> to vector<8x8xf32>
    %89 = vector.shape_cast %85 : vector<8x8xf32> to vector<1x8x8xf32>
    %90 = vector.shape_cast %86 : vector<8x8xf32> to vector<1x8x8xf32>
    %91 = vector.shape_cast %87 : vector<8x8xf32> to vector<1x8x8xf32>
    %92 = vector.shape_cast %88 : vector<8x8xf32> to vector<1x8x8xf32>
    %93 = tpu.concatenate %89, %90, %91, %92 in 0 : vector<1x8x8xf32>, vector<1x8x8xf32>, vector<1x8x8xf32>, vector<1x8x8xf32> -> vector<4x8x8xf32>
    %94 = vector.extract_strided_slice %75 {offsets = [0, 0], sizes = [8, 8], strides = [1, 1]} : vector<8x32xf32> to vector<8x8xf32>
    %95 = vector.extract_strided_slice %75 {offsets = [0, 8], sizes = [8, 8], strides = [1, 1]} : vector<8x32xf32> to vector<8x8xf32>
    %96 = vector.extract_strided_slice %75 {offsets = [0, 16], sizes = [8, 8], strides = [1, 1]} : vector<8x32xf32> to vector<8x8xf32>
    %97 = vector.extract_strided_slice %75 {offsets = [0, 24], sizes = [8, 8], strides = [1, 1]} : vector<8x32xf32> to vector<8x8xf32>
    %98 = vector.shape_cast %94 : vector<8x8xf32> to vector<1x8x8xf32>
    %99 = vector.shape_cast %95 : vector<8x8xf32> to vector<1x8x8xf32>
    %100 = vector.shape_cast %96 : vector<8x8xf32> to vector<1x8x8xf32>
    %101 = vector.shape_cast %97 : vector<8x8xf32> to vector<1x8x8xf32>
    %102 = tpu.concatenate %98, %99, %100, %101 in 0 : vector<1x8x8xf32>, vector<1x8x8xf32>, vector<1x8x8xf32>, vector<1x8x8xf32> -> vector<4x8x8xf32>
    "tpu.trace_start"() <{level = 10 : i32, message = "hqd,hkd->hqk"}> : () -> ()
    %cst_32 = arith.constant dense<0.000000e+00> : vector<4x8x8xf32>
    %103 = tpu.matmul %84, %93, %cst_32 {dimension_numbers = #tpu.dot_dimension_numbers<[2], [2], [1], [1], [0, 0, 0, 1, 1, 1], [0], [0]>} : vector<4x8x8xf32>, vector<4x8x8xf32>, vector<4x8x8xf32> -> vector<4x8x8xf32>
    "tpu.trace_stop"() : () -> ()
    %104 = vector.shape_cast %5 : vector<1x8xf32> to vector<1x1x8xf32>
    %105 = vector.broadcast %104 : vector<1x1x8xf32> to vector<4x8x8xf32>
    %106 = arith.addf %103, %105 : vector<4x8x8xf32>
    %cst_33 = arith.constant dense<0xFF800000> : vector<4x8xf32>
    %107 = vector.multi_reduction <maximumf>, %106, %cst_33 [2] : vector<4x8x8xf32> to vector<4x8xf32>
    %108 = vector.shape_cast %107 : vector<4x8xf32> to vector<4x8x1xf32>
    %109 = vector.broadcast %108 : vector<4x8x1xf32> to vector<4x8x8xf32>
    %110 = arith.subf %106, %109 : vector<4x8x8xf32>
    %111 = math.exp %110 : vector<4x8x8xf32>
    %cst_34 = arith.constant dense<0.000000e+00> : vector<4x8xf32>
    %112 = vector.multi_reduction <add>, %111, %cst_34 [2] : vector<4x8x8xf32> to vector<4x8xf32>
    %113 = vector.shape_cast %112 : vector<4x8xf32> to vector<4x8x1xf32>
    %114 = tpu.reciprocal %113 {approx = true} : vector<4x8x1xf32> -> vector<4x8x1xf32>
    %115 = vector.broadcast %114 : vector<4x8x1xf32> to vector<4x8x8xf32>
    %116 = arith.mulf %111, %115 : vector<4x8x8xf32>
    "tpu.trace_start"() <{level = 10 : i32, message = "hqk,hkd->hqd"}> : () -> ()
    %cst_35 = arith.constant dense<0.000000e+00> : vector<4x8x8xf32>
    %117 = tpu.matmul %116, %102, %cst_35 {dimension_numbers = #tpu.dot_dimension_numbers<[2], [1], [1], [2], [0, 0, 0, 1, 1, 2], [0], [0]>} : vector<4x8x8xf32>, vector<4x8x8xf32>, vector<4x8x8xf32> -> vector<4x8x8xf32>
    "tpu.trace_stop"() : () -> ()
    %118 = arith.truncf %117 : vector<4x8x8xf32> to vector<4x8x8xbf16>
    %c0_36 = arith.constant 0 : index
    %c0_37 = arith.constant 0 : index
    %c0_38 = arith.constant 0 : index
    %119 = vector.load %arg9[%c0_36, %c0_37, %c0_38] : memref<4x8x32xbf16, #tpu.memory_space<vmem>>, vector<4x8x32xbf16>
    "tpu.trace_start"() <{level = 10 : i32, message = "hqc,hcd->hqd"}> : () -> ()
    %cst_39 = arith.constant dense<0.000000e+00> : vector<4x8x32xf32>
    %120 = tpu.matmul %118, %119, %cst_39 {dimension_numbers = #tpu.dot_dimension_numbers<[2], [1], [1], [2], [0, 0, 0, 1, 1, 2], [0], [0]>} : vector<4x8x8xbf16>, vector<4x8x32xbf16>, vector<4x8x32xf32> -> vector<4x8x32xf32>
    "tpu.trace_stop"() : () -> ()
    %cst_40 = arith.constant dense<0.000000e+00> : vector<8x32xf32>
    %121 = vector.multi_reduction <add>, %120, %cst_40 [0] : vector<4x8x32xf32> to vector<8x32xf32>
    %c0_41 = arith.constant 0 : index
    %c0_42 = arith.constant 0 : index
    %122 = vector.load %arg10[%c0_41, %c0_42] : memref<1x32xf32, #tpu.memory_space<vmem>>, vector<1x32xf32>
    %123 = vector.shape_cast %122 : vector<1x32xf32> to vector<32xf32>
    %124 = vector.shape_cast %123 : vector<32xf32> to vector<1x32xf32>
    %125 = vector.broadcast %124 : vector<1x32xf32> to vector<8x32xf32>
    %126 = arith.addf %121, %125 : vector<8x32xf32>
    %127 = arith.addf %1, %126 : vector<8x32xf32>
    %c0_43 = arith.constant 0 : index
    %c0_44 = arith.constant 0 : index
    %128 = vector.load %arg13[%c0_43, %c0_44] : memref<1x32xf32, #tpu.memory_space<vmem>>, vector<1x32xf32>
    %129 = vector.shape_cast %128 : vector<1x32xf32> to vector<32xf32>
    %c0_45 = arith.constant 0 : index
    %c0_46 = arith.constant 0 : index
    %130 = vector.load %arg14[%c0_45, %c0_46] : memref<1x32xf32, #tpu.memory_space<vmem>>, vector<1x32xf32>
    %131 = vector.shape_cast %130 : vector<1x32xf32> to vector<32xf32>
    %cst_47 = arith.constant dense<0.000000e+00> : vector<8xf32>
    %132 = vector.multi_reduction <add>, %127, %cst_47 [1] : vector<8x32xf32> to vector<8xf32>
    %133 = vector.shape_cast %132 : vector<8xf32> to vector<8x1xf32>
    %cst_48 = arith.constant 3.200000e+01 : f32
    %134 = vector.broadcast %cst_48 : f32 to vector<8x1xf32>
    %135 = arith.divf %133, %134 : vector<8x1xf32>
    %136 = vector.broadcast %135 : vector<8x1xf32> to vector<8x32xf32>
    %137 = arith.subf %127, %136 : vector<8x32xf32>
    %138 = arith.mulf %137, %137 : vector<8x32xf32>
    %cst_49 = arith.constant dense<0.000000e+00> : vector<8xf32>
    %139 = vector.multi_reduction <add>, %138, %cst_49 [1] : vector<8x32xf32> to vector<8xf32>
    %140 = vector.shape_cast %139 : vector<8xf32> to vector<8x1xf32>
    %cst_50 = arith.constant 0.0322580636 : f32
    %141 = vector.broadcast %cst_50 : f32 to vector<8x1xf32>
    %142 = arith.mulf %140, %141 : vector<8x1xf32>
    %143 = math.sqrt %142 : vector<8x1xf32>
    %cst_51 = arith.constant 9.99999997E-7 : f32
    %144 = vector.broadcast %cst_51 : f32 to vector<8x1xf32>
    %145 = arith.addf %143, %144 : vector<8x1xf32>
    %146 = tpu.reciprocal %145 {approx = true} : vector<8x1xf32> -> vector<8x1xf32>
    %147 = vector.broadcast %146 : vector<8x1xf32> to vector<8x32xf32>
    %148 = arith.mulf %137, %147 : vector<8x32xf32>
    %149 = vector.shape_cast %129 : vector<32xf32> to vector<1x32xf32>
    %150 = vector.broadcast %149 : vector<1x32xf32> to vector<8x32xf32>
    %151 = arith.mulf %150, %148 : vector<8x32xf32>
    %152 = vector.shape_cast %131 : vector<32xf32> to vector<1x32xf32>
    %153 = vector.broadcast %152 : vector<1x32xf32> to vector<8x32xf32>
    %154 = arith.addf %151, %153 : vector<8x32xf32>
    %155 = arith.truncf %154 : vector<8x32xf32> to vector<8x32xbf16>
    %c0_52 = arith.constant 0 : index
    %c0_53 = arith.constant 0 : index
    %156 = vector.load %arg15[%c0_52, %c0_53] : memref<32x128xbf16, #tpu.memory_space<vmem>>, vector<32x128xbf16>
    %cst_54 = arith.constant dense<0.000000e+00> : vector<8x128xf32>
    %157 = tpu.matmul %155, %156, %cst_54 {dimension_numbers = #tpu.dot_dimension_numbers<[1], [0], [0], [1], [0, 0, 1, 1], [], []>} : vector<8x32xbf16>, vector<32x128xbf16>, vector<8x128xf32> -> vector<8x128xf32>
    %c0_55 = arith.constant 0 : index
    %c0_56 = arith.constant 0 : index
    %158 = vector.load %arg16[%c0_55, %c0_56] : memref<1x128xf32, #tpu.memory_space<vmem>>, vector<1x128xf32>
    %159 = vector.shape_cast %158 : vector<1x128xf32> to vector<128xf32>
    %160 = vector.shape_cast %159 : vector<128xf32> to vector<1x128xf32>
    %161 = vector.broadcast %160 : vector<1x128xf32> to vector<8x128xf32>
    %162 = arith.addf %157, %161 : vector<8x128xf32>
    %cst_57 = arith.constant 0.000000e+00 : f32
    %163 = vector.broadcast %cst_57 : f32 to vector<8x128xf32>
    %164 = arith.maximumf %162, %163 : vector<8x128xf32>
    %165 = arith.truncf %164 : vector<8x128xf32> to vector<8x128xbf16>
    %c0_58 = arith.constant 0 : index
    %c0_59 = arith.constant 0 : index
    %166 = vector.load %arg17[%c0_58, %c0_59] : memref<128x32xbf16, #tpu.memory_space<vmem>>, vector<128x32xbf16>
    %cst_60 = arith.constant dense<0.000000e+00> : vector<8x32xf32>
    %167 = tpu.matmul %165, %166, %cst_60 {dimension_numbers = #tpu.dot_dimension_numbers<[1], [0], [0], [1], [0, 0, 1, 1], [], []>} : vector<8x128xbf16>, vector<128x32xbf16>, vector<8x32xf32> -> vector<8x32xf32>
    %c0_61 = arith.constant 0 : index
    %c0_62 = arith.constant 0 : index
    %168 = vector.load %arg18[%c0_61, %c0_62] : memref<1x32xf32, #tpu.memory_space<vmem>>, vector<1x32xf32>
    %169 = vector.shape_cast %168 : vector<1x32xf32> to vector<32xf32>
    %170 = vector.shape_cast %169 : vector<32xf32> to vector<1x32xf32>
    %171 = vector.broadcast %170 : vector<1x32xf32> to vector<8x32xf32>
    %172 = arith.addf %167, %171 : vector<8x32xf32>
    %173 = arith.addf %127, %172 : vector<8x32xf32>
    %c0_63 = arith.constant 0 : index
    %c0_64 = arith.constant 0 : index
    %c0_65 = arith.constant 0 : index
    %174 = vector.load %arg19[%c0_63, %c0_64, %c0_65] : memref<1x8x32xf32, #tpu.memory_space<vmem>>, vector<1x8x32xf32>
    %175 = vector.shape_cast %174 : vector<1x8x32xf32> to vector<8x32xf32>
    %176 = vector.shape_cast %173 : vector<8x32xf32> to vector<1x8x32xf32>
    tpu.vector_store %arg19[%c0_63, %c0_64, %c0_65], %176 {strides = array<i32>} : memref<1x8x32xf32, #tpu.memory_space<vmem>>, vector<1x8x32xf32>,
    return
  }
  func.func @transform_0(%arg0: i32, %arg1: i32) -> (i32, i32, i32) {
    %c0_i32 = arith.constant 0 : i32
    %c0_i32_0 = arith.constant 0 : i32
    return %arg0, %arg1, %c0_i32 : i32, i32, i32
  }
  func.func @transform_1(%arg0: i32, %arg1: i32) -> (i32, i32, i32) {
    %c0_i32 = arith.constant 0 : i32
    %c0_i32_0 = arith.constant 0 : i32
    %c0_i32_1 = arith.constant 0 : i32
    return %arg0, %c0_i32, %c0_i32_0 : i32, i32, i32
  }
  func.func @transform_2(%arg0: i32, %arg1: i32) -> (i32, i32, i32) {
    %c0_i32 = arith.constant 0 : i32
    %c0_i32_0 = arith.constant 0 : i32
    %c0_i32_1 = arith.constant 0 : i32
    return %arg0, %c0_i32, %c0_i32_0 : i32, i32, i32
  }
  func.func @transform_3(%arg0: i32, %arg1: i32) -> (i32, i32) {
    %c0_i32 = arith.constant 0 : i32
    %c0_i32_0 = arith.constant 0 : i32
    %c0_i32_1 = arith.constant 0 : i32
    return %c0_i32, %c0_i32_0 : i32, i32
  }
  func.func @transform_4(%arg0: i32, %arg1: i32) -> (i32, i32) {
    %c0_i32 = arith.constant 0 : i32
    %c0_i32_0 = arith.constant 0 : i32
    %c0_i32_1 = arith.constant 0 : i32
    return %c0_i32, %c0_i32_0 : i32, i32
  }
  func.func @transform_5(%arg0: i32, %arg1: i32) -> (i32, i32) {
    %c0_i32 = arith.constant 0 : i32
    %c0_i32_0 = arith.constant 0 : i32
    %c0_i32_1 = arith.constant 0 : i32
    return %c0_i32, %c0_i32_0 : i32, i32
  }
  func.func @transform_6(%arg0: i32, %arg1: i32) -> (i32, i32) {
    %c0_i32 = arith.constant 0 : i32
    %c0_i32_0 = arith.constant 0 : i32
    %c0_i32_1 = arith.constant 0 : i32
    return %c0_i32, %c0_i32_0 : i32, i32
  }
  func.func @transform_7(%arg0: i32, %arg1: i32) -> (i32, i32, i32) {
    %c0_i32 = arith.constant 0 : i32
    %c0_i32_0 = arith.constant 0 : i32
    %c0_i32_1 = arith.constant 0 : i32
    %c0_i32_2 = arith.constant 0 : i32
    return %c0_i32, %c0_i32_0, %c0_i32_1 : i32, i32, i32
  }
  func.func @transform_8(%arg0: i32, %arg1: i32) -> (i32, i32) {
    %c0_i32 = arith.constant 0 : i32
    %c0_i32_0 = arith.constant 0 : i32
    %c0_i32_1 = arith.constant 0 : i32
    return %c0_i32, %c0_i32_0 : i32, i32
  }
  func.func @transform_9(%arg0: i32, %arg1: i32) -> (i32, i32) {
    %c0_i32 = arith.constant 0 : i32
    %c0_i32_0 = arith.constant 0 : i32
    %c0_i32_1 = arith.constant 0 : i32
    return %c0_i32, %c0_i32_0 : i32, i32
  }
  func.func @transform_10(%arg0: i32, %arg1: i32) -> (i32, i32) {
    %c0_i32 = arith.constant 0 : i32
    %c0_i32_0 = arith.constant 0 : i32
    %c0_i32_1 = arith.constant 0 : i32
    return %c0_i32, %c0_i32_0 : i32, i32
  }
  func.func @transform_11(%arg0: i32, %arg1: i32) -> (i32, i32) {
    %c0_i32 = arith.constant 0 : i32
    %c0_i32_0 = arith.constant 0 : i32
    %c0_i32_1 = arith.constant 0 : i32
    return %c0_i32, %c0_i32_0 : i32, i32
  }
  func.func @transform_12(%arg0: i32, %arg1: i32) -> (i32, i32) {
    %c0_i32 = arith.constant 0 : i32
    %c0_i32_0 = arith.constant 0 : i32
    %c0_i32_1 = arith.constant 0 : i32
    return %c0_i32, %c0_i32_0 : i32, i32
  }
  func.func @transform_13(%arg0: i32, %arg1: i32) -> (i32, i32) {
    %c0_i32 = arith.constant 0 : i32
    %c0_i32_0 = arith.constant 0 : i32
    %c0_i32_1 = arith.constant 0 : i32
    return %c0_i32, %c0_i32_0 : i32, i32
  }
  func.func @transform_14(%arg0: i32, %arg1: i32) -> (i32, i32) {
    %c0_i32 = arith.constant 0 : i32
    %c0_i32_0 = arith.constant 0 : i32
    %c0_i32_1 = arith.constant 0 : i32
    return %c0_i32, %c0_i32_0 : i32, i32
  }
  func.func @transform_15(%arg0: i32, %arg1: i32) -> (i32, i32) {
    %c0_i32 = arith.constant 0 : i32
    %c0_i32_0 = arith.constant 0 : i32
    %c0_i32_1 = arith.constant 0 : i32
    return %c0_i32, %c0_i32_0 : i32, i32
  }
  func.func @transform_16(%arg0: i32, %arg1: i32) -> (i32, i32) {
    %c0_i32 = arith.constant 0 : i32
    %c0_i32_0 = arith.constant 0 : i32
    %c0_i32_1 = arith.constant 0 : i32
    return %c0_i32, %c0_i32_0 : i32, i32
  }
  func.func @transform_17(%arg0: i32, %arg1: i32) -> (i32, i32, i32) {
    %c0_i32 = arith.constant 0 : i32
    %c0_i32_0 = arith.constant 0 : i32
    return %arg0, %arg1, %c0_i32 : i32, i32, i32
  }
}

module attributes {stable_mosaic.version = 11 : i64} {
  func.func @encoder_layer_kernel(%arg0: i32, %arg1: i32, %arg2: memref<1x8x32xf32, #tpu.memory_space<vmem>>, %arg3: memref<1x8x32xf32, #tpu.memory_space<vmem>>, %arg4: memref<1x1x8xf32, #tpu.memory_space<vmem>>, %arg5: memref<32x32xbf16, #tpu.memory_space<vmem>>, %arg6: memref<1x32xf32, #tpu.memory_space<vmem>>, %arg7: memref<32x64xbf16, #tpu.memory_space<vmem>>, %arg8: memref<1x64xf32, #tpu.memory_space<vmem>>, %arg9: memref<4x8x32xbf16, #tpu.memory_space<vmem>>, %arg10: memref<1x32xf32, #tpu.memory_space<vmem>>, %arg11: memref<1x32xf32, #tpu.memory_space<vmem>>, %arg12: memref<1x32xf32, #tpu.memory_space<vmem>>, %arg13: memref<1x32xf32, #tpu.memory_space<vmem>>, %arg14: memref<1x32xf32, #tpu.memory_space<vmem>>, %arg15: memref<32x128xbf16, #tpu.memory_space<vmem>>, %arg16: memref<1x128xf32, #tpu.memory_space<vmem>>, %arg17: memref<128x32xbf16, #tpu.memory_space<vmem>>, %arg18: memref<1x32xf32, #tpu.memory_space<vmem>>, %arg19: memref<1x8x32xf32, #tpu.memory_space<vmem>>) attributes {dimension_semantics = [#tpu.dimension_semantics<parallel>, #tpu.dimension_semantics<parallel>], iteration_bounds = array<i64: 2, 1>, scalar_prefetch = 0 : i64, scratch_operands = 0 : i64, tpu.core_type = #tpu.core_type<tc>, window_params = [{transform_indices = @transform_0, window_bounds = array<i64: 1, 8, 32>}, {transform_indices = @transform_1, window_bounds = array<i64: 1, 8, 32>}, {transform_indices = @transform_2, window_bounds = array<i64: 1, 1, 8>}, {pipeline_mode = #tpu.pipeline_mode<synchronous>, transform_indices = @transform_3, window_bounds = array<i64: 32, 32>}, {pipeline_mode = #tpu.pipeline_mode<synchronous>, transform_indices = @transform_4, window_bounds = array<i64: 1, 32>}, {pipeline_mode = #tpu.pipeline_mode<synchronous>, transform_indices = @transform_5, window_bounds = array<i64: 32, 64>}, {pipeline_mode = #tpu.pipeline_mode<synchronous>, transform_indices = @transform_6, window_bounds = array<i64: 1, 64>}, {pipeline_mode = #tpu.pipeline_mode<synchronous>, transform_indices = @transform_7, window_bounds = array<i64: 4, 8, 32>}, {pipeline_mode = #tpu.pipeline_mode<synchronous>, transform_indices = @transform_8, window_bounds = array<i64: 1, 32>}, {pipeline_mode = #tpu.pipeline_mode<synchronous>, transform_indices = @transform_9, window_bounds = array<i64: 1, 32>}, {pipeline_mode = #tpu.pipeline_mode<synchronous>, transform_indices = @transform_10, window_bounds = array<i64: 1, 32>}, {pipeline_mode = #tpu.pipeline_mode<synchronous>, transform_indices = @transform_11, window_bounds = array<i64: 1, 32>}, {pipeline_mode = #tpu.pipeline_mode<synchronous>, transform_indices = @transform_12, window_bounds = array<i64: 1, 32>}, {pipeline_mode = #tpu.pipeline_mode<synchronous>, transform_indices = @transform_13, window_bounds = array<i64: 32, 128>}, {pipeline_mode = #tpu.pipeline_mode<synchronous>, transform_indices = @transform_14, window_bounds = array<i64: 1, 128>}, {pipeline_mode = #tpu.pipeline_mode<synchronous>, transform_indices = @transform_15, window_bounds = array<i64: 128, 32>}, {pipeline_mode = #tpu.pipeline_mode<synchronous>, transform_indices = @transform_16, window_bounds = array<i64: 1, 32>}, {transform_indices = @transform_17, window_bounds = array<i64: 1, 8, 32>}]} {
    %c0 = arith.constant 0 : index
    %c0_0 = arith.constant 0 : index
    %c0_1 = arith.constant 0 : index
    %0 = vector.load %arg2[%c0, %c0_0, %c0_1] : memref<1x8x32xf32, #tpu.memory_space<vmem>>, vector<1x8x32xf32>
    %1 = vector.shape_cast %0 : vector<1x8x32xf32> to vector<8x32xf32>
    %c0_2 = arith.constant 0 : index
    %c0_3 = arith.constant 0 : index
    %c0_4 = arith.constant 0 : index
    %2 = vector.load %arg3[%c0_2, %c0_3, %c0_4] : memref<1x8x32xf32, #tpu.memory_space<vmem>>, vector<1x8x32xf32>
    %3 = vector.shape_cast %2 : vector<1x8x32xf32> to vector<8x32xf32>
    %c0_5 = arith.constant 0 : index
    %c0_6 = arith.constant 0 : index
    %c0_7 = arith.constant 0 : index
    %4 = vector.load %arg4[%c0_5, %c0_6, %c0_7] : memref<1x1x8xf32, #tpu.memory_space<vmem>>, vector<1x1x8xf32>
    %5 = vector.shape_cast %4 : vector<1x1x8xf32> to vector<1x8xf32>
    %c0_8 = arith.constant 0 : index
    %c0_9 = arith.constant 0 : index
    %6 = vector.load %arg11[%c0_8, %c0_9] : memref<1x32xf32, #tpu.memory_space<vmem>>, vector<1x32xf32>
    %7 = vector.shape_cast %6 : vector<1x32xf32> to vector<32xf32>
    %c0_10 = arith.constant 0 : index
    %c0_11 = arith.constant 0 : index
    %8 = vector.load %arg12[%c0_10, %c0_11] : memref<1x32xf32, #tpu.memory_space<vmem>>, vector<1x32xf32>
    %9 = vector.shape_cast %8 : vector<1x32xf32> to vector<32xf32>
    %cst = arith.constant dense<0.000000e+00> : vector<8xf32>
    %10 = vector.multi_reduction <add>, %1, %cst [1] : vector<8x32xf32> to vector<8xf32>
    %11 = vector.shape_cast %10 : vector<8xf32> to vector<8x1xf32>
    %cst_12 = arith.constant 3.200000e+01 : f32
    %12 = vector.broadcast %cst_12 : f32 to vector<8x1xf32>
    %13 = arith.divf %11, %12 : vector<8x1xf32>
    %14 = vector.broadcast %13 : vector<8x1xf32> to vector<8x32xf32>
    %15 = arith.subf %1, %14 : vector<8x32xf32>
    %16 = arith.mulf %15, %15 : vector<8x32xf32>
    %cst_13 = arith.constant dense<0.000000e+00> : vector<8xf32>
    %17 = vector.multi_reduction <add>, %16, %cst_13 [1] : vector<8x32xf32> to vector<8xf32>
    %18 = vector.shape_cast %17 : vector<8xf32> to vector<8x1xf32>
    %cst_14 = arith.constant 0.0322580636 : f32
    %19 = vector.broadcast %cst_14 : f32 to vector<8x1xf32>
    %20 = arith.mulf %18, %19 : vector<8x1xf32>
    %21 = math.sqrt %20 : vector<8x1xf32>
    %cst_15 = arith.constant 9.99999997E-7 : f32
    %22 = vector.broadcast %cst_15 : f32 to vector<8x1xf32>
    %23 = arith.addf %21, %22 : vector<8x1xf32>
    %24 = tpu.reciprocal %23 {approx = true} : vector<8x1xf32> -> vector<8x1xf32>
    %25 = vector.broadcast %24 : vector<8x1xf32> to vector<8x32xf32>
    %26 = arith.mulf %15, %25 : vector<8x32xf32>
    %27 = vector.shape_cast %7 : vector<32xf32> to vector<1x32xf32>
    %28 = vector.broadcast %27 : vector<1x32xf32> to vector<8x32xf32>
    %29 = arith.mulf %28, %26 : vector<8x32xf32>
    %30 = vector.shape_cast %9 : vector<32xf32> to vector<1x32xf32>
    %31 = vector.broadcast %30 : vector<1x32xf32> to vector<8x32xf32>
    %32 = arith.addf %29, %31 : vector<8x32xf32>
    %cst_16 = arith.constant dense<0.000000e+00> : vector<8xf32>
    %33 = vector.multi_reduction <add>, %3, %cst_16 [1] : vector<8x32xf32> to vector<8xf32>
    %34 = vector.shape_cast %33 : vector<8xf32> to vector<8x1xf32>
    %cst_17 = arith.constant 3.200000e+01 : f32
    %35 = vector.broadcast %cst_17 : f32 to vector<8x1xf32>
    %36 = arith.divf %34, %35 : vector<8x1xf32>
    %37 = vector.broadcast %36 : vector<8x1xf32> to vector<8x32xf32>
    %38 = arith.subf %3, %37 : vector<8x32xf32>
    %39 = arith.mulf %38, %38 : vector<8x32xf32>
    %cst_18 = arith.constant dense<0.000000e+00> : vector<8xf32>
    %40 = vector.multi_reduction <add>, %39, %cst_18 [1] : vector<8x32xf32> to vector<8xf32>
    %41 = vector.shape_cast %40 : vector<8xf32> to vector<8x1xf32>
    %cst_19 = arith.constant 0.0322580636 : f32
    %42 = vector.broadcast %cst_19 : f32 to vector<8x1xf32>
    %43 = arith.mulf %41, %42 : vector<8x1xf32>
    %44 = math.sqrt %43 : vector<8x1xf32>
    %cst_20 = arith.constant 9.99999997E-7 : f32
    %45 = vector.broadcast %cst_20 : f32 to vector<8x1xf32>
    %46 = arith.addf %44, %45 : vector<8x1xf32>
    %47 = tpu.reciprocal %46 {approx = true} : vector<8x1xf32> -> vector<8x1xf32>
    %48 = vector.broadcast %47 : vector<8x1xf32> to vector<8x32xf32>
    %49 = arith.mulf %38, %48 : vector<8x32xf32>
    %50 = vector.shape_cast %7 : vector<32xf32> to vector<1x32xf32>
    %51 = vector.broadcast %50 : vector<1x32xf32> to vector<8x32xf32>
    %52 = arith.mulf %51, %49 : vector<8x32xf32>
    %53 = vector.shape_cast %9 : vector<32xf32> to vector<1x32xf32>
    %54 = vector.broadcast %53 : vector<1x32xf32> to vector<8x32xf32>
    %55 = arith.addf %52, %54 : vector<8x32xf32>
    %56 = arith.truncf %32 : vector<8x32xf32> to vector<8x32xbf16>
    %c0_21 = arith.constant 0 : index
    %c0_22 = arith.constant 0 : index
    %57 = vector.load %arg5[%c0_21, %c0_22] : memref<32x32xbf16, #tpu.memory_space<vmem>>, vector<32x32xbf16>
    %cst_23 = arith.constant dense<0.000000e+00> : vector<8x32xf32>
    %58 = tpu.matmul %56, %57, %cst_23 {dimension_numbers = #tpu.dot_dimension_numbers<[1], [0], [0], [1], [0, 0, 1, 1], [], []>} : vector<8x32xbf16>, vector<32x32xbf16>, vector<8x32xf32> -> vector<8x32xf32>
    %c0_24 = arith.constant 0 : index
    %c0_25 = arith.constant 0 : index
    %59 = vector.load %arg6[%c0_24, %c0_25] : memref<1x32xf32, #tpu.memory_space<vmem>>, vector<1x32xf32>
    %60 = vector.shape_cast %59 : vector<1x32xf32> to vector<32xf32>
    %61 = vector.shape_cast %60 : vector<32xf32> to vector<1x32xf32>
    %62 = vector.broadcast %61 : vector<1x32xf32> to vector<8x32xf32>
    %63 = arith.addf %58, %62 : vector<8x32xf32>
    %cst_26 = arith.constant 0.353553385 : f32
    %64 = vector.broadcast %cst_26 : f32 to vector<8x32xf32>
    %65 = arith.mulf %63, %64 : vector<8x32xf32>
    %66 = arith.truncf %55 : vector<8x32xf32> to vector<8x32xbf16>
    %c0_27 = arith.constant 0 : index
    %c0_28 = arith.constant 0 : index
    %67 = vector.load %arg7[%c0_27, %c0_28] : memref<32x64xbf16, #tpu.memory_space<vmem>>, vector<32x64xbf16>
    %cst_29 = arith.constant dense<0.000000e+00> : vector<8x64xf32>
    %68 = tpu.matmul %66, %67, %cst_29 {dimension_numbers = #tpu.dot_dimension_numbers<[1], [0], [0], [1], [0, 0, 1, 1], [], []>} : vector<8x32xbf16>, vector<32x64xbf16>, vector<8x64xf32> -> vector<8x64xf32>
    %c0_30 = arith.constant 0 : index
    %c0_31 = arith.constant 0 : index
    %69 = vector.load %arg8[%c0_30, %c0_31] : memref<1x64xf32, #tpu.memory_space<vmem>>, vector<1x64xf32>
    %70 = vector.shape_cast %69 : vector<1x64xf32> to vector<64xf32>
    %71 = vector.shape_cast %70 : vector<64xf32> to vector<1x64xf32>
    %72 = vector.broadcast %71 : vector<1x64xf32> to vector<8x64xf32>
    %73 = arith.addf %68, %72 : vector<8x64xf32>
    %74 = vector.extract_strided_slice %73 {offsets = [0, 0], sizes = [8, 32], strides = [1, 1]} : vector<8x64xf32> to vector<8x32xf32>
    %75 = vector.extract_strided_slice %73 {offsets = [0, 32], sizes = [8, 32], strides = [1, 1]} : vector<8x64xf32> to vector<8x32xf32>
    %76 = vector.extract_strided_slice %65 {offsets = [0, 0], sizes = [8, 8], strides = [1, 1]} : vector<8x32xf32> to vector<8x8xf32>
    %77 = vector.extract_strided_slice %65 {offsets = [0, 8], sizes = [8, 8], strides = [1, 1]} : vector<8x32xf32> to vector<8x8xf32>
    %78 = vector.extract_strided_slice %65 {offsets = [0, 16], sizes = [8, 8], strides = [1, 1]} : vector<8x32xf32> to vector<8x8xf32>
    %79 = vector.extract_strided_slice %65 {offsets = [0, 24], sizes = [8, 8], strides = [1, 1]} : vector<8x32xf32> to vector<8x8xf32>
    %80 = vector.shape_cast %76 : vector<8x8xf32> to vector<1x8x8xf32>
    %81 = vector.shape_cast %77 : vector<8x8xf32> to vector<1x8x8xf32>
    %82 = vector.shape_cast %78 : vector<8x8xf32> to vector<1x8x8xf32>
    %83 = vector.shape_cast %79 : vector<8x8xf32> to vector<1x8x8xf32>
    %84 = tpu.concatenate %80, %81, %82, %83 in 0 : vector<1x8x8xf32>, vector<1x8x8xf32>, vector<1x8x8xf32>, vector<1x8x8xf32> -> vector<4x8x8xf32>
    %85 = vector.extract_strided_slice %74 {offsets = [0, 0], sizes = [8, 8], strides = [1, 1]} : vector<8x32xf32> to vector<8x8xf32>
    %86 = vector.extract_strided_slice %74 {offsets = [0, 8], sizes = [8, 8], strides = [1, 1]} : vector<8x32xf32> to vector<8x8xf32>
    %87 = vector.extract_strided_slice %74 {offsets = [0, 16], sizes = [8, 8], strides = [1, 1]} : vector<8x32xf32> to vector<8x8xf32>
    %88 = vector.extract_strided_slice %74 {offsets = [0, 24], sizes = [8, 8], strides = [1, 1]} : vector<8x32xf32> to vector<8x8xf32>
    %89 = vector.shape_cast %85 : vector<8x8xf32> to vector<1x8x8xf32>
    %90 = vector.shape_cast %86 : vector<8x8xf32> to vector<1x8x8xf32>
    %91 = vector.shape_cast %87 : vector<8x8xf32> to vector<1x8x8xf32>
    %92 = vector.shape_cast %88 : vector<8x8xf32> to vector<1x8x8xf32>
    %93 = tpu.concatenate %89, %90, %91, %92 in 0 : vector<1x8x8xf32>, vector<1x8x8xf32>, vector<1x8x8xf32>, vector<1x8x8xf32> -> vector<4x8x8xf32>
    %94 = vector.extract_strided_slice %75 {offsets = [0, 0], sizes = [8, 8], strides = [1, 1]} : vector<8x32xf32> to vector<8x8xf32>
    %95 = vector.extract_strided_slice %75 {offsets = [0, 8], sizes = [8, 8], strides = [1, 1]} : vector<8x32xf32> to vector<8x8xf32>
    %96 = vector.extract_strided_slice %75 {offsets = [0, 16], sizes = [8, 8], strides = [1, 1]} : vector<8x32xf32> to vector<8x8xf32>
    %97 = vector.extract_strided_slice %75 {offsets = [0, 24], sizes = [8, 8], strides = [1, 1]} : vector<8x32xf32> to vector<8x8xf32>
    %98 = vector.shape_cast %94 : vector<8x8xf32> to vector<1x8x8xf32>
    %99 = vector.shape_cast %95 : vector<8x8xf32> to vector<1x8x8xf32>
    %100 = vector.shape_cast %96 : vector<8x8xf32> to vector<1x8x8xf32>
    %101 = vector.shape_cast %97 : vector<8x8xf32> to vector<1x8x8xf32>
    %102 = tpu.concatenate %98, %99, %100, %101 in 0 : vector<1x8x8xf32>, vector<1x8x8xf32>, vector<1x8x8xf32>, vector<1x8x8xf32> -> vector<4x8x8xf32>
    "tpu.trace_start"() <{level = 10 : i32, message = "hqd,hkd->hqk"}> : () -> ()
    %cst_32 = arith.constant dense<0.000000e+00> : vector<4x8x8xf32>
    %103 = tpu.matmul %84, %93, %cst_32 {dimension_numbers = #tpu.dot_dimension_numbers<[2], [2], [1], [1], [0, 0, 0, 1, 1, 1], [0], [0]>} : vector<4x8x8xf32>, vector<4x8x8xf32>, vector<4x8x8xf32> -> vector<4x8x8xf32>
    "tpu.trace_stop"() : () -> ()
    %104 = vector.shape_cast %5 : vector<1x8xf32> to vector<1x1x8xf32>
    %105 = vector.broadcast %104 : vector<1x1x8xf32> to vector<4x8x8xf32>
    %106 = arith.addf %103, %105 : vector<4x8x8xf32>
    %cst_33 = arith.constant dense<0xFF800000> : vector<4x8xf32>
    %107 = vector.multi_reduction <maximumf>, %106, %cst_33 [2] : vector<4x8x8xf32> to vector<4x8xf32>
    %108 = vector.shape_cast %107 : vector<4x8xf32> to vector<4x8x1xf32>
    %109 = vector.broadcast %108 : vector<4x8x1xf32> to vector<4x8x8xf32>
    %110 = arith.subf %106, %109 : vector<4x8x8xf32>
    %111 = math.exp %110 : vector<4x8x8xf32>
    %cst_34 = arith.constant dense<0.000000e+00> : vector<4x8xf32>
    %112 = vector.multi_reduction <add>, %111, %cst_34 [2] : vector<4x8x8xf32> to vector<4x8xf32>
    %113 = vector.shape_cast %112 : vector<4x8xf32> to vector<4x8x1xf32>
    %114 = tpu.reciprocal %113 {approx = true} : vector<4x8x1xf32> -> vector<4x8x1xf32>
    %115 = vector.broadcast %114 : vector<4x8x1xf32> to vector<4x8x8xf32>
    %116 = arith.mulf %111, %115 : vector<4x8x8xf32>
    "tpu.trace_start"() <{level = 10 : i32, message = "hqk,hkd->hqd"}> : () -> ()
    %cst_35 = arith.constant dense<0.000000e+00> : vector<4x8x8xf32>
    %117 = tpu.matmul %116, %102, %cst_35 {dimension_numbers = #tpu.dot_dimension_numbers<[2], [1], [1], [2], [0, 0, 0, 1, 1, 2], [0], [0]>} : vector<4x8x8xf32>, vector<4x8x8xf32>, vector<4x8x8xf32> -> vector<4x8x8xf32>
    "tpu.trace_stop"() : () -> ()
    %118 = arith.truncf %117 : vector<4x8x8xf32> to vector<4x8x8xbf16>
    %c0_36 = arith.constant 0 : index
    %c0_37 = arith.constant 0 : index
    %c0_38 = arith.constant 0 : index
    %119 = vector.load %arg9[%c0_36, %c0_37, %c0_38] : memref<4x8x32xbf16, #tpu.memory_space<vmem>>, vector<4x8x32xbf16>
    "tpu.trace_start"() <{level = 10 : i32, message = "hqc,hcd->hqd"}> : () -> ()
    %cst_39 = arith.constant dense<0.000000e+00> : vector<4x8x32xf32>
    %120 = tpu.matmul %118, %119, %cst_39 {dimension_numbers = #tpu.dot_dimension_numbers<[2], [1], [1], [2], [0, 0, 0, 1, 1, 2], [0], [0]>} : vector<4x8x8xbf16>, vector<4x8x32xbf16>, vector<4x8x32xf32> -> vector<4x8x32xf32>
    "tpu.trace_stop"() : () -> ()
    %cst_40 = arith.constant dense<0.000000e+00> : vector<8x32xf32>
    %121 = vector.multi_reduction <add>, %120, %cst_40 [0] : vector<4x8x32xf32> to vector<8x32xf32>
    %c0_41 = arith.constant 0 : index
    %c0_42 = arith.constant 0 : index
    %122 = vector.load %arg10[%c0_41, %c0_42] : memref<1x32xf32, #tpu.memory_space<vmem>>, vector<1x32xf32>
    %123 = vector.shape_cast %122 : vector<1x32xf32> to vector<32xf32>
    %124 = vector.shape_cast %123 : vector<32xf32> to vector<1x32xf32>
    %125 = vector.broadcast %124 : vector<1x32xf32> to vector<8x32xf32>
    %126 = arith.addf %121, %125 : vector<8x32xf32>
    %127 = arith.addf %1, %126 : vector<8x32xf32>
    %c0_43 = arith.constant 0 : index
    %c0_44 = arith.constant 0 : index
    %128 = vector.load %arg13[%c0_43, %c0_44] : memref<1x32xf32, #tpu.memory_space<vmem>>, vector<1x32xf32>
    %129 = vector.shape_cast %128 : vector<1x32xf32> to vector<32xf32>
    %c0_45 = arith.constant 0 : index
    %c0_46 = arith.constant 0 : index
    %130 = vector.load %arg14[%c0_45, %c0_46] : memref<1x32xf32, #tpu.memory_space<vmem>>, vector<1x32xf32>
    %131 = vector.shape_cast %130 : vector<1x32xf32> to vector<32xf32>
    %cst_47 = arith.constant dense<0.000000e+00> : vector<8xf32>
    %132 = vector.multi_reduction <add>, %127, %cst_47 [1] : vector<8x32xf32> to vector<8xf32>
    %133 = vector.shape_cast %132 : vector<8xf32> to vector<8x1xf32>
    %cst_48 = arith.constant 3.200000e+01 : f32
    %134 = vector.broadcast %cst_48 : f32 to vector<8x1xf32>
    %135 = arith.divf %133, %134 : vector<8x1xf32>
    %136 = vector.broadcast %135 : vector<8x1xf32> to vector<8x32xf32>
    %137 = arith.subf %127, %136 : vector<8x32xf32>
    %138 = arith.mulf %137, %137 : vector<8x32xf32>
    %cst_49 = arith.constant dense<0.000000e+00> : vector<8xf32>
    %139 = vector.multi_reduction <add>, %138, %cst_49 [1] : vector<8x32xf32> to vector<8xf32>
    %140 = vector.shape_cast %139 : vector<8xf32> to vector<8x1xf32>
    %cst_50 = arith.constant 0.0322580636 : f32
    %141 = vector.broadcast %cst_50 : f32 to vector<8x1xf32>
    %142 = arith.mulf %140, %141 : vector<8x1xf32>
    %143 = math.sqrt %142 : vector<8x1xf32>
    %cst_51 = arith.constant 9.99999997E-7 : f32
    %144 = vector.broadcast %cst_51 : f32 to vector<8x1xf32>
    %145 = arith.addf %143, %144 : vector<8x1xf32>
    %146 = tpu.reciprocal %145 {approx = true} : vector<8x1xf32> -> vector<8x1xf32>
    %147 = vector.broadcast %146 : vector<8x1xf32> to vector<8x32xf32>
    %148 = arith.mulf %137, %147 : vector<8x32xf32>
    %149 = vector.shape_cast %129 : vector<32xf32> to vector<1x32xf32>
    %150 = vector.broadcast %149 : vector<1x32xf32> to vector<8x32xf32>
    %151 = arith.mulf %150, %148 : vector<8x32xf32>
    %152 = vector.shape_cast %131 : vector<32xf32> to vector<1x32xf32>
    %153 = vector.broadcast %152 : vector<1x32xf32> to vector<8x32xf32>
    %154 = arith.addf %151, %153 : vector<8x32xf32>
    %155 = arith.truncf %154 : vector<8x32xf32> to vector<8x32xbf16>
    %c0_52 = arith.constant 0 : index
    %c0_53 = arith.constant 0 : index
    %156 = vector.load %arg15[%c0_52, %c0_53] : memref<32x128xbf16, #tpu.memory_space<vmem>>, vector<32x128xbf16>
    %cst_54 = arith.constant dense<0.000000e+00> : vector<8x128xf32>
    %157 = tpu.matmul %155, %156, %cst_54 {dimension_numbers = #tpu.dot_dimension_numbers<[1], [0], [0], [1], [0, 0, 1, 1], [], []>} : vector<8x32xbf16>, vector<32x128xbf16>, vector<8x128xf32> -> vector<8x128xf32>
    %c0_55 = arith.constant 0 : index
    %c0_56 = arith.constant 0 : index
    %158 = vector.load %arg16[%c0_55, %c0_56] : memref<1x128xf32, #tpu.memory_space<vmem>>, vector<1x128xf32>
    %159 = vector.shape_cast %158 : vector<1x128xf32> to vector<128xf32>
    %160 = vector.shape_cast %159 : vector<128xf32> to vector<1x128xf32>
    %161 = vector.broadcast %160 : vector<1x128xf32> to vector<8x128xf32>
    %162 = arith.addf %157, %161 : vector<8x128xf32>
    %cst_57 = arith.constant 0.000000e+00 : f32
    %163 = vector.broadcast %cst_57 : f32 to vector<8x128xf32>
    %164 = arith.maximumf %162, %163 : vector<8x128xf32>
    %165 = arith.truncf %164 : vector<8x128xf32> to vector<8x128xbf16>
    %c0_58 = arith.constant 0 : index
    %c0_59 = arith.constant 0 : index
    %166 = vector.load %arg17[%c0_58, %c0_59] : memref<128x32xbf16, #tpu.memory_space<vmem>>, vector<128x32xbf16>
    %cst_60 = arith.constant dense<0.000000e+00> : vector<8x32xf32>
    %167 = tpu.matmul %165, %166, %cst_60 {dimension_numbers = #tpu.dot_dimension_numbers<[1], [0], [0], [1], [0, 0, 1, 1], [], []>} : vector<8x128xbf16>, vector<128x32xbf16>, vector<8x32xf32> -> vector<8x32xf32>
    %c0_61 = arith.constant 0 : index
    %c0_62 = arith.constant 0 : index
    %168 = vector.load %arg18[%c0_61, %c0_62] : memref<1x32xf32, #tpu.memory_space<vmem>>, vector<1x32xf32>
    %169 = vector.shape_cast %168 : vector<1x32xf32> to vector<32xf32>
    %170 = vector.shape_cast %169 : vector<32xf32> to vector<1x32xf32>
    %171 = vector.broadcast %170 : vector<1x32xf32> to vector<8x32xf32>
    %172 = arith.addf %167, %171 : vector<8x32xf32>
    %173 = arith.addf %127, %172 : vector<8x32xf32>
    %c0_63 = arith.constant 0 : index
    %c0_64 = arith.constant 0 : index
    %c0_65 = arith.constant 0 : index
    %174 = vector.load %arg19[%c0_63, %c0_64, %c0_65] : memref<1x8x32xf32, #tpu.memory_space<vmem>>, vector<1x8x32xf32>
    %175 = vector.shape_cast %174 : vector<1x8x32xf32> to vector<8x32xf32>
    %176 = vector.shape_cast %173 : vector<8x32xf32> to vector<1x8x32xf32>
    tpu.vector_store %arg19[%c0_63, %c0_64, %c0_65], %176 {strides = array<i32>} : memref<1x8x32xf32, #tpu.memory_space<vmem>>, vector<1x8x32xf32>,
    return
  }
  func.func @transform_0(%arg0: i32, %arg1: i32) -> (i32, i32, i32) {
    %c0_i32 = arith.constant 0 : i32
    %c0_i32_0 = arith.constant 0 : i32
    return %arg0, %arg1, %c0_i32 : i32, i32, i32
  }
  func.func @transform_1(%arg0: i32, %arg1: i32) -> (i32, i32, i32) {
    %c0_i32 = arith.constant 0 : i32
    %c0_i32_0 = arith.constant 0 : i32
    %c0_i32_1 = arith.constant 0 : i32
    return %arg0, %c0_i32, %c0_i32_0 : i32, i32, i32
  }
  func.func @transform_2(%arg0: i32, %arg1: i32) -> (i32, i32, i32) {
    %c0_i32 = arith.constant 0 : i32
    %c0_i32_0 = arith.constant 0 : i32
    %c0_i32_1 = arith.constant 0 : i32
    return %arg0, %c0_i32, %c0_i32_0 : i32, i32, i32
  }
  func.func @transform_3(%arg0: i32, %arg1: i32) -> (i32, i32) {
    %c0_i32 = arith.constant 0 : i32
    %c0_i32_0 = arith.constant 0 : i32
    %c0_i32_1 = arith.constant 0 : i32
    return %c0_i32, %c0_i32_0 : i32, i32
  }
  func.func @transform_4(%arg0: i32, %arg1: i32) -> (i32, i32) {
    %c0_i32 = arith.constant 0 : i32
    %c0_i32_0 = arith.constant 0 : i32
    %c0_i32_1 = arith.constant 0 : i32
    return %c0_i32, %c0_i32_0 : i32, i32
  }
  func.func @transform_5(%arg0: i32, %arg1: i32) -> (i32, i32) {
    %c0_i32 = arith.constant 0 : i32
    %c0_i32_0 = arith.constant 0 : i32
    %c0_i32_1 = arith.constant 0 : i32
    return %c0_i32, %c0_i32_0 : i32, i32
  }
  func.func @transform_6(%arg0: i32, %arg1: i32) -> (i32, i32) {
    %c0_i32 = arith.constant 0 : i32
    %c0_i32_0 = arith.constant 0 : i32
    %c0_i32_1 = arith.constant 0 : i32
    return %c0_i32, %c0_i32_0 : i32, i32
  }
  func.func @transform_7(%arg0: i32, %arg1: i32) -> (i32, i32, i32) {
    %c0_i32 = arith.constant 0 : i32
    %c0_i32_0 = arith.constant 0 : i32
    %c0_i32_1 = arith.constant 0 : i32
    %c0_i32_2 = arith.constant 0 : i32
    return %c0_i32, %c0_i32_0, %c0_i32_1 : i32, i32, i32
  }
  func.func @transform_8(%arg0: i32, %arg1: i32) -> (i32, i32) {
    %c0_i32 = arith.constant 0 : i32
    %c0_i32_0 = arith.constant 0 : i32
    %c0_i32_1 = arith.constant 0 : i32
    return %c0_i32, %c0_i32_0 : i32, i32
  }
  func.func @transform_9(%arg0: i32, %arg1: i32) -> (i32, i32) {
    %c0_i32 = arith.constant 0 : i32
    %c0_i32_0 = arith.constant 0 : i32
    %c0_i32_1 = arith.constant 0 : i32
    return %c0_i32, %c0_i32_0 : i32, i32
  }
  func.func @transform_10(%arg0: i32, %arg1: i32) -> (i32, i32) {
    %c0_i32 = arith.constant 0 : i32
    %c0_i32_0 = arith.constant 0 : i32
    %c0_i32_1 = arith.constant 0 : i32
    return %c0_i32, %c0_i32_0 : i32, i32
  }
  func.func @transform_11(%arg0: i32, %arg1: i32) -> (i32, i32) {
    %c0_i32 = arith.constant 0 : i32
    %c0_i32_0 = arith.constant 0 : i32
    %c0_i32_1 = arith.constant 0 : i32
    return %c0_i32, %c0_i32_0 : i32, i32
  }
  func.func @transform_12(%arg0: i32, %arg1: i32) -> (i32, i32) {
    %c0_i32 = arith.constant 0 : i32
    %c0_i32_0 = arith.constant 0 : i32
    %c0_i32_1 = arith.constant 0 : i32
    return %c0_i32, %c0_i32_0 : i32, i32
  }
  func.func @transform_13(%arg0: i32, %arg1: i32) -> (i32, i32) {
    %c0_i32 = arith.constant 0 : i32
    %c0_i32_0 = arith.constant 0 : i32
    %c0_i32_1 = arith.constant 0 : i32
    return %c0_i32, %c0_i32_0 : i32, i32
  }
  func.func @transform_14(%arg0: i32, %arg1: i32) -> (i32, i32) {
    %c0_i32 = arith.constant 0 : i32
    %c0_i32_0 = arith.constant 0 : i32
    %c0_i32_1 = arith.constant 0 : i32
    return %c0_i32, %c0_i32_0 : i32, i32
  }
  func.func @transform_15(%arg0: i32, %arg1: i32) -> (i32, i32) {
    %c0_i32 = arith.constant 0 : i32
    %c0_i32_0 = arith.constant 0 : i32
    %c0_i32_1 = arith.constant 0 : i32
    return %c0_i32, %c0_i32_0 : i32, i32
  }
  func.func @transform_16(%arg0: i32, %arg1: i32) -> (i32, i32) {
    %c0_i32 = arith.constant 0 : i32
    %c0_i32_0 = arith.constant 0 : i32
    %c0_i32_1 = arith.constant 0 : i32
    return %c0_i32, %c0_i32_0 : i32, i32
  }
  func.func @transform_17(%arg0: i32, %arg1: i32) -> (i32, i32, i32) {
    %c0_i32 = arith.constant 0 : i32
    %c0_i32_0 = arith.constant 0 : i32
    return %arg0, %arg1, %c0_i32 : i32, i32, i32
  }
}

</mosaic_0001>

<bundles_post_ra>
// kernel: tpu_custom_call.1
= control target key start
LH: loop header
LB: loop body
LE: loop exit
PB: predicated region body
PF: predicated region fallthrough
CT: control target
= control target key end

     0   :  { %s2208_s0 = inlined_call_operand.vmem [shape: f32[2,8,32], index: 0, kind: input, shape index: {}]   ;;  %s2209_s1 = inlined_call_operand.vmem [shape: f32[2,8,32], index: 1, kind: input, shape index: {}]   ;;  %s2210_s2 = inlined_call_operand.hbm [shape: f32[2,1,8], index: 2, kind: input, shape index: {}]   ;;  %s2211_s3 = inlined_call_operand.vmem [shape: bf16[32,32], index: 3, kind: input, shape index: {}]   ;;  %s2212_s4 = inlined_call_operand.vmem [shape: f32[1,32], index: 4, kind: input, shape index: {}]   ;;  %s2213_s5 = inlined_call_operand.vmem [shape: bf16[32,64], index: 5, kind: input, shape index: {}]   ;;  %s2214_s6 = inlined_call_operand.vmem [shape: f32[1,64], index: 6, kind: input, shape index: {}]   ;;  %s2215_s7 = inlined_call_operand.vmem [shape: bf16[4,8,32], index: 7, kind: input, shape index: {}]   ;;  %s2216_s8 = inlined_call_operand.vmem [shape: f32[1,32], index: 8, kind: input, shape index: {}]   ;;  %s2217_s9 = inlined_call_operand.vmem [shape: f32[1,32], index: 9, kind: input, shape index: {}]   ;;  %s2218_s10 = inlined_call_operand.vmem [shape: f32[1,32], index: 10, kind: input, shape index: {}]   ;;  %s2219_s11 = inlined_call_operand.vmem [shape: f32[1,32], index: 11, kind: input, shape index: {}]   ;;  %s2220_s12 = inlined_call_operand.vmem [shape: f32[1,32], index: 12, kind: input, shape index: {}]   ;;  %s2221_s13 = inlined_call_operand.hbm [shape: bf16[32,128], index: 13, kind: input, shape index: {}]   ;;  %s2222_s14 = inlined_call_operand.vmem [shape: f32[1,128], index: 14, kind: input, shape index: {}]   ;;  %s2223_s15 = inlined_call_operand.vmem [shape: bf16[128,32], index: 15, kind: input, shape index: {}]   ;;  %s2224_s16 = inlined_call_operand.vmem [shape: f32[1,32], index: 16, kind: input, shape index: {}]   ;;  %s2225_s17 = inlined_call_operand.hbm [shape: f32[2,8,32], index: 17, kind: output, shape index: {}]  }
   0x1   :  { %2229 = sst [smem:[#allocation13_spill]] %s2208_s0 }
   0x2   :  { %2230 = sst [smem:[#allocation14_spill]] %s2209_s1 }
   0x3   :  { %2231 = sst [smem:[#allocation15_spill]] %s2210_s2 }
   0x4   :  { %2232 = sst [smem:[#allocation16_spill]] %s2219_s11 }
   0x5   :  { %2233 = sst [smem:[#allocation17_spill]] %s2220_s12 }
   0x6   :  { %2234 = sst [smem:[#allocation18_spill]] %s2221_s13 }
   0x7   :  { %2235 = sst [smem:[#allocation19_spill]] %s2222_s14 }
   0x8   :  { %2236 = sst [smem:[#allocation20_spill]] %s2224_s16 }
   0x9   :  { %2237 = sst [smem:[#allocation21_spill]] %s2225_s17 }
   0xa   :  { %22 = vsyncpa [#allocation3], 0 }
   0xb   :  { %24 = vsyncpa [#allocation3 + $0x1], 0 }
   0xc   :  { %25 = vsyncpa [#allocation6], 0 }
   0xd   :  { %26 = vsyncpa [#allocation4], 0 }
   0xe   :  { %28 = vsyncpa [#allocation4 + $0x1], 0  ;;  %s1912_s24 = smov 0   ;;  %s1914_s25 = smov 0  }
   0xf   :  { %s1916_s26 = smov 0   ;;  %s1918_s27 = smov 0  }
  0x10   :  { %s1920_s28 = smov 0   ;;  %s1922_s29 = smov 0  }
  0x11 LB: > { %2238 = sst [smem:[#allocation11_spill]] %s1792_s24  ;;  %s1433_s0 = sadd.s32 4294967295, %s1812_s29   ;;  %s1812_s29 = sphi %s1922_s29, %s34_s29   ;;  %s1808_s28 = sphi %s1920_s28, %s2261_s28   ;;  %s1804_s27 = sphi %s1918_s27, %s2260_s27   ;;  %s1800_s26 = sphi %s1916_s26, %s2259_s26   ;;  %s1796_s25 = sphi %s1914_s25, %s2258_s25   ;;  %s1792_s24 = sphi %s1912_s24, %s2257_s24  }
  0x12   : > { %p1435_p0 = scmp.ge.s32.totalorder %s1812_s29, 1  ;;  %p1944_p1 = scmp.eq.s32.totalorder %s1433_s0, 0 }
  0x13   : > { %p453_p2 = scmp.lt.s32.totalorder %s1812_s29, 3  ;;  %s2240_s13 = sld [smem:[#allocation18_spill]] }
  0x14   : > { %s1814_s21 = smov [#allocation5]   ;;  %p1437_p6 = scmp.ge.s32.totalorder %s1812_s29, 2 }
  0x15   : > { %p1952_p3 = pnand %p1435_p0, %p453_p2  ;;  %s496_s22 = sshll.u32 %s1814_s21, 4  ;;  %s497_s22 = int_to_ptr.vmem [resolvable:$true] %s496_s22 }
  0x16   : > { %s1815_s23 = smov 64   ;;  %s1816_s18 = smov 4  }
  0x17   : > { %p1544_p4 = pneg %p1952_p3  ;;  %s1434_s19 = sadd.s32 4294967294, %s1812_s29  }
  0x18   : > { %s107_s17 = sadd.s32 1, %s1800_s26  ;;  %p114_p8 = scmp.ne.s32.totalorder %s1800_s26, %s1796_s25 }
  0x19   : > { %s494_s1 = sshll.u32 %s2240_s13, 4  ;;  %p1545_p5 = pnand %p1544_p4, %p1944_p1  ;;  %s495_s1 = int_to_ptr.hbm [resolvable:$true] %s494_s1 }
  0x1a   : > { %s46_s13 = sadd.s32 1, %s1808_s28  ;;  %p115_p9 = scmp.eq.s32.totalorder %s1812_s29, 0 }
  0x1b   : > { %1547 = dma.hbm_to_vmem [thread:$0]  (!%p1545_p5), %s495_s1, 256, %s497_s22, [#allocation6], %s1815_s23, %s1815_s23, %s1816_s18  }
  0x1c   : > { %p48_p7 = scmp.ge.s32.totalorder %s46_s13, 2  ;;  %p120_p10 = scmp.ne.s32.totalorder %s1796_s25, %s1792_s24 }
  0x1d   : > { %p1971_p11 = por %p115_p9, %p114_p8  ;;  %p440_p13 = scmp.eq.s32.totalorder %s1433_s0, 1 }
  0x1e   : > { %s2263_s13 = smov (%p48_p7, %s46_s13), 0  ;;  %p1977_p12 = por %p1944_p1, %p120_p10 }
  0x1f   : > { %2242 = sst [smem:[#allocation12_spill]] %s2263_s13  ;;  %s104_s22 = ssub.s32 %s1808_s28, %s2263_s13 }
  0x20   : > { %p105_p0 = scmp.eq.s32.totalorder %s104_s22, 0  ;;  %p446_p2 = scmp.eq.s32.totalorder %s1434_s19, 1 }
  0x21   : > { %p1983_p4 = por %p440_p13, %p114_p8  ;;  %p1557_p5 = scmp.lt.s32.totalorder %s1812_s29, 2 }
  0x22   : > { %s1989_s18 = scalar_select %p105_p0, %s1800_s26, %s107_s17  }
  0x23   : > { %p1991_p7 = por %p446_p2, %p120_p10  ;;  %s536_s16 = sand.u32 1, %s1800_s26  }
  0x24   : > { %s2247_s2 = sld [smem:[#allocation15_spill]]  ;;  %s539_s13 = scalar_lea.vmem [#allocation2], %s536_s16 }
  0x25   : > { %s546_s0 = sshll.u32 %s539_s13, 4  ;;  %p1549_p8 = pnand %p1557_p5, %p1971_p11  ;;  %s547_s0 = int_to_ptr.vmem [resolvable:$true] %s546_s0 }
  0x26   : > { %s537_s19 = scalar_lea.sflag [#allocation3], %s536_s16  ;;  %s2005_s17 = sand.u32 (!%p1952_p3), 1, %s1796_s25  }
  0x27   : > { %s558_s12 = scalar_lea.sflag (!%p1952_p3), [#allocation3], %s2005_s17  ;;  %s560_s14 = scalar_lea.vmem (!%p1952_p3), [#allocation2], %s2005_s17 }
  0x28   : > { %555 = sbr.rel (%p1952_p3) target bundleno = 1811 (0x713), region = 88 }
  0x2a   : > { %s542_s11 = scalar_lea.hbm %s2247_s2, %s1808_s28 }
  0x2b   : > { %s544_s22 = sshll.u32 %s542_s11, 4  ;;  %s545_s22 = int_to_ptr.hbm [resolvable:$true] %s544_s22 }
  0x2c   : > { %1551 = dma.hbm_to_vmem [thread:$0]  (!%p1549_p8), %s545_s22, 16, %s547_s0, %s537_s19  }
  0x2d   : > { %1779 = dma.done.wait (%p1977_p12), %s558_s12, 16  }
  0x2e   : > { %1781 = vsyncadd (%p1977_p12), %s558_s12, 4294967280 }
  0x2f   : > { %1783 = dma.done.wait (%p1944_p1), [#allocation6], 256  }
  0x30   : > { %1785 = vsyncadd (%p1944_p1), [#allocation6], 4294967040  ;;  %p627_p3 = scmp.lt.s32.totalorder %s1804_s27, 1  ;;  %s2248_s21 = sld [smem:[#allocation14_spill]]  ;;  %vm644_vm0 = vcmask 261120   ;;  %v1817_v4 = vmov 32.0  }
  0x31   : > { %s2249_s19 = sld [smem:[#allocation13_spill]]  ;;  %1636 = vrcp.f32 %v1817_v4  ;;  %v1525_v21 = vld [vmem:[%s2213_s5 + $0x8] sm:$0xff]  ;;  %v1524_v22 = vld [vmem:[%s2213_s5] sm:$0xff]  ;;  %vm804_vm6 = vcmask 64512   ;;  %s1818_s16 = smov 120   ;;  %vm1060_vm7 = vcmask 1043456  }
  0x32   : > { %s628_s11 = scalar_select %p627_p3, %s1804_s27, 1  ;;  %780 = vmatpush.bf16.msra.mxu1 %v1525_v21  ;;  %v1523_v26 = vld [vmem:[%s2211_s3 + $0x8] sm:$0xff]  ;;  %v1522_v30 = vld [vmem:[%s2211_s3] sm:$0xff] }
  0x33   : > { %742 = vmatpush.bf16.msra.mxu0 %v1523_v26  ;;  %v1626_v49 = vld [vmem:[%s2217_s9] ss:$0 sm:$0xff]  ;;  %s1819_s20 = smov 112   ;;  %s1820_s22 = smov 104  }
  0x34   : > { %s1441_s13 = sshll.u32 %s628_s11, 3  ;;  %v1627_v53 = vld [vmem:[%s2218_s10] ss:$0 sm:$0xff]  ;;  %s2250_s1 = sld [smem:[#allocation16_spill]] }
  0x35   : > { %v1628_v63 = vld [vmem:[%s2214_s6] ss:$0 sm:$0xff]  ;;  %s2251_s30 = sld [smem:[#allocation17_spill]] }
  0x36   : > { %s637_s0 = scalar_lea.vmem %s2248_s21, %s1441_s13  ;;  %781 = vmatpush.bf16.msra.mxu1 %v1524_v22 }
  0x37   : > { %v640_v0 = vld [vmem:[%s637_s0] sm:$0xff]  ;;  %s633_s12 = scalar_lea.vmem %s2249_s19, %s1441_s13  ;;  %v1637_v5 = vpop.eup %1636  ;;  %743 = vmatpush.bf16.msra.mxu0 %v1522_v30 }
  0x38   : > { %v685_v1 = vsel %vm644_vm0, %v640_v0, 0.0  ;;  %v2026_v2 = vld [vmem:[%s633_s12] sm:$0xff]  ;;  %v649_v6 = vmul.f32 32.0, %v1637_v5  ;;  %vm653_vm1 = vweird.f32 %v1637_v5 }
  0x39   : > { %686 = vadd.xlane.f32.xlu0 %v685_v1  ;;  %v645_v3 = vsel %vm644_vm0, %v2026_v2, 0.0 }
  0x3a   : > { %v650_v7 = vsub.f32 1.0, %v649_v6 }
  0x3c   : > { %v651_v8 = vmul.f32 %v1637_v5, %v650_v7 }
  0x3e   : > { %v652_v9 = vadd.f32 %v1637_v5, %v651_v8 }
  0x40   : > { %v2030_v10 = vsel %vm653_vm1, %v1637_v5, %v652_v9 }
  0x41   : > { %646 = vadd.xlane.f32.xlu0 %v645_v3  ;;  %v1629_v3 = vld [vmem:[%s2212_s4] ss:$0 sm:$0xff] }
  0xac   : > { %v687_v11 = vpop.xlane.xlu0 %686 }
  0xad   : > { %v688_v12 = vmul.f32 %v687_v11, %v2030_v10 }
  0xaf   : > { %v689_v13 = vsub.f32 %v640_v0, %v688_v12 }
  0xb1   : > { %v690_v14 = vmul.f32 %v689_v13, %v689_v13 }
  0xb3   : > { %v691_v15 = vsel %vm644_vm0, %v690_v14, 0.0 }
  0xb4   : > { %692 = vadd.xlane.f32.xlu1 %v691_v15  ;;  %v647_v16 = vpop.xlane.xlu0 %646 }
  0xb5   : > { %v655_v17 = vmul.f32 %v2030_v10, %v647_v16  ;;  %v1630_v16 = vld [vmem:[%s560_s14] ss:$0 sm:$0xff]  ;;  %s1821_s14 = smov 96  }
  0xb7   : > { %v656_v18 = vsub.f32 %v2026_v2, %v655_v17 }
  0xb9   : > { %v657_v19 = vmul.f32 %v656_v18, %v656_v18 }
  0xbb   : > { %v658_v20 = vsel %vm644_vm0, %v657_v19, 0.0 }
  0xbc   : > { %659 = vadd.xlane.f32.xlu1 %v658_v20 }
 0x127   : > { %v693_v23 = vpop.xlane.xlu1 %692 }
 0x128   : > { %v694_v24 = vmul.f32 0.032258064, %v693_v23 }
 0x12a   : > { %1638 = vrsqrt.f32 %v694_v24  ;;  %vm702_vm2 = vcmp.eq.f32.partialorder %v694_v24, inf  ;;  %v705_v39 = vand.u32 2147483648, %v694_v24  ;;  %vm704_vm3 = vcmp.eq.f32.partialorder %v694_v24, 0.0 }
 0x12f   : > { %v660_v25 = vpop.xlane.xlu1 %659 }
 0x130   : > { %v1639_v27 = vpop.eup %1638  ;;  %v661_v28 = vmul.f32 0.032258064, %v660_v25 }
 0x131   : > { %v696_v29 = vmul.f32 %v1639_v27, %v694_v24 }
 0x132   : > { %1640 = vrsqrt.f32 %v661_v28  ;;  %vm669_vm4 = vcmp.eq.f32.partialorder %v661_v28, inf  ;;  %v672_v47 = vand.u32 2147483648, %v661_v28  ;;  %vm671_vm5 = vcmp.eq.f32.partialorder %v661_v28, 0.0 }
 0x133   : > { %v697_v31 = vmul.f32 %v1639_v27, %v696_v29 }
 0x135   : > { %v698_v32 = vmul.f32 0.5, %v697_v31 }
 0x137   : > { %v699_v33 = vsub.f32 1.5, %v698_v32 }
 0x138   : > { %v1641_v34 = vpop.eup %1640 }
 0x139   : > { %v663_v35 = vmul.f32 %v1641_v34, %v661_v28  ;;  %v700_v36 = vmul.f32 %v1639_v27, %v699_v33 }
 0x13b   : > { %v664_v37 = vmul.f32 %v1641_v34, %v663_v35  ;;  %v701_v38 = vmul.f32 %v700_v36, %v694_v24 }
 0x13d   : > { %v703_v40 = vsel %vm702_vm2, %v694_v24, %v701_v38  ;;  %v665_v41 = vmul.f32 0.5, %v664_v37 }
 0x13e   : > { %v706_v42 = vsel %vm704_vm3, %v705_v39, %v703_v40 }
 0x13f   : > { %v707_v43 = vadd.f32 1e-06, %v706_v42  ;;  %v666_v44 = vsub.f32 1.5, %v665_v41 }
 0x141   : > { %1642 = vrcp.f32 %v707_v43  ;;  %v667_v45 = vmul.f32 %v1641_v34, %v666_v44 }
 0x143   : > { %v668_v46 = vmul.f32 %v667_v45, %v661_v28 }
 0x145   : > { %v670_v48 = vsel %vm669_vm4, %v661_v28, %v668_v46 }
 0x146   : > { %v673_v50 = vsel %vm671_vm5, %v672_v47, %v670_v48 }
 0x147   : > { %v1643_v51 = vpop.eup %1642  ;;  %v674_v52 = vadd.f32 1e-06, %v673_v50 }
 0x148   : > { %v709_v54 = vmul.f32 %v1643_v51, %v689_v13 }
 0x149   : > { %1644 = vrcp.f32 %v674_v52 }
 0x14a   : > { %v710_v55 = vmul.f32 %v1626_v49, %v709_v54 }
 0x14c   : > { %v711_v56 = vadd.f32 %v1627_v53, %v710_v55 }
 0x14e   : > { %v750_v57 = vpack.c.bf16 %v711_v56, %v711_v56 }
 0x14f   : > { %v1645_v58 = vpop.eup %1644 }
 0x150   : > { %1460 = vmatmul.msk.bf16.vlgmr.msra.gmra.mxu1 %vm644_vm0, %v750_v57  ;;  %v676_v59 = vmul.f32 %v1645_v58, %v656_v18 }
 0x152   : > { %v680_v60 = vmul.f32 %v1626_v49, %v676_v59 }
 0x154   : > { %v684_v61 = vadd.f32 %v1627_v53, %v680_v60  ;;  %v1053_v60 = vld [vmem:[%s2215_s7] sm:$0xf] }
 0x156   : > { %v712_v62 = vpack.c.bf16 %v684_v61, %v684_v61  ;;  %v1062_v61 = vsel %vm1060_vm7, %v1053_v60, 0 }
 0x158   : > { %1451 = vmatmul.msk.bf16.vlgmr.msra.gmra.mxu0 %vm644_vm0, %v712_v62 }
 0x1cd   : > { %v783_v0 = vpop.f32.mrf.mxu1 }
 0x1ce   : > { %v784_v1 = vadd.f32 %v1628_v63, %v783_v0 }
 0x1d0   : > { %795 = vrot.lane.b32.xlu2 %v784_v1, %s1818_s16  ;;  %1461 = vmatpush.xpose.msk.msra.mxu2 %vm804_vm6, %v784_v1 }
 0x1d1   : > { %797 = vrot.lane.b32.xlu0 %v784_v1, %s1819_s20 }
 0x1d5   : > { %v745_v4 = vpop.f32.mrf.mxu0  ;;  %v785_v5 = vpop.f32.mrf.mxu1 }
 0x1d6   : > { %v746_v6 = vadd.f32 %v1629_v3, %v745_v4 }
 0x1d8   : > { %v749_v7 = vmul.f32 0.35355338, %v746_v6 }
 0x1da   : > { %790 = vrot.lane.b32.xlu1 %v749_v7, %s1819_s20  ;;  %788 = vrot.lane.b32.xlu2 %v749_v7, %s1818_s16  ;;  %s2254_s16 = sld [smem:[#allocation21_spill]] }
 0x1db   : > { %1462 = vmatmul.msk.f32.vlgmr.msra.gmra.mxu2 %vm804_vm6, %v749_v7 }
 0x1dd   : > { %v747_v8 = vpop.f32.mrf.mxu0 }
 0x1e2   : > { %799 = vrot.lane.b32.xlu2 %v784_v1, %s1820_s22 }
 0x1ea   : > { %792 = vrot.lane.b32.xlu2 %v749_v7, %s1820_s22  ;;  %s2252_s22 = sld [smem:[#allocation19_spill]] }
 0x22a   : > { %v796_v9 = vpop.permute.xlu2 %795 }
 0x22b   : > { %1463 = vmatpush.xpose.msk.msrb.mxu0 %vm804_vm6, %v796_v9  ;;  %v1616_v34 = vpack.i.bf16 %v796_v9, %v784_v1 }
 0x234   : > { %v789_v11 = vpop.permute.xlu2 %788 }
 0x235   : > { %1464 = vmatmul.msk.f32.vlgmr.msrb.gmra.mxu0 %vm804_vm6, %v789_v11  ;;  %v1054_v11 = vld [vmem:[%s2215_s7 + $0x4] sm:$0xf] }
 0x23c   : > { %v2067_v12 = vpop.permute.xlu2 %799 }
 0x23d   : > { %1467 = vmatpush.xpose.msk.msrb.mxu1 %vm804_vm6, %v2067_v12 }
 0x243   : > { %v2071_v13 = vpop.permute.xlu0 %797 }
 0x244   : > { %1465 = vmatpush.xpose.msk.msrb.mxu2 %vm804_vm6, %v2071_v13  ;;  %v793_v14 = vpop.permute.xlu2 %792  ;;  %v1621_v56 = vpack.i.bf16 %v2067_v12, %v2071_v13  ;;  %v1081_v12 = vsel %vm1060_vm7, %v1054_v11, 0  ;;  %v1529_v11 = vld [vmem:[%s2223_s15 + $0x8] sm:$0xff] }
 0x245   : > { %1468 = vmatmul.msk.f32.vlgmr.msrb.gmra.mxu1 %vm804_vm6, %v793_v14 }
 0x24c   : > { %v791_v15 = vpop.permute.xlu1 %790 }
 0x24d   : > { %1466 = vmatmul.msk.f32.vlgmr.msrb.gmra.mxu2 %vm804_vm6, %v791_v15  ;;  %v1055_v15 = vld [vmem:[%s2215_s7 + $0x8] sm:$0xf] }
 0x25e   : > { %v826_v17 = vpop.f32.mrf.mxu2 }
 0x25f   : > { %v827_v18 = vadd.f32 %v1630_v16, %v826_v17  ;;  %v1100_v17 = vsel %vm1060_vm7, %v1055_v15, 0 }
 0x261   : > { %v901_v19 = vsel %vm804_vm6, %v827_v18, -inf }
 0x262   : > { %902 = vmax.xlane.f32.xlu2 %v901_v19 }
 0x2b2   : > { %v850_v20 = vpop.f32.mrf.mxu0 }
 0x2b3   : > { %v851_v21 = vadd.f32 %v1630_v16, %v850_v20 }
 0x2b5   : > { %v904_v22 = vsel %vm804_vm6, %v851_v21, -inf }
 0x2b6   : > { %905 = vmax.xlane.f32.xlu0 %v904_v22 }
 0x2c2   : > { %v898_v23 = vpop.f32.mrf.mxu1 }
 0x2c3   : > { %v899_v24 = vadd.f32 %v1630_v16, %v898_v23 }
 0x2c5   : > { %v910_v25 = vsel %vm804_vm6, %v899_v24, -inf }
 0x2c6   : > { %911 = vmax.xlane.f32.xlu2 %v910_v25 }
 0x2d0   : > { %v874_v26 = vpop.f32.mrf.mxu2 }
 0x2d1   : > { %v875_v27 = vadd.f32 %v1630_v16, %v874_v26  ;;  %v1056_v16 = vld [vmem:[%s2215_s7 + $0xc] sm:$0xf] }
 0x2d3   : > { %v907_v28 = vsel %vm804_vm6, %v875_v27, -inf }
 0x2d4   : > { %908 = vmax.xlane.f32.xlu1 %v907_v28 }
 0x2d5   : > { %v903_v29 = vpop.xlane.xlu2 %902 }
 0x2d6   : > { %v913_v30 = vsub.f32 %v827_v18, %v903_v29  ;;  %v1119_v18 = vsel %vm1060_vm7, %v1056_v16, 0 }
 0x2d8   : > { %v917_v31 = vmul.f32 1.442695, %v913_v30 }
 0x2da   : > { %1646 = vpow2.f32 %v917_v31 }
 0x2e0   : > { %v1647_v32 = vpop.eup %1646 }
 0x2e1   : > { %v925_v33 = vsel %vm804_vm6, %v1647_v32, 0.0 }
 0x2e2   : > { %926 = vadd.xlane.f32.xlu0 %v925_v33 }
 0x2ed   : > { %1617 = vrot.lane.b32.xlu1 %v1616_v34, %s1821_s14  ;;  %v1631_v34 = vld [vmem:[%s2216_s8] ss:$0 sm:$0xff] }
 0x329   : > { %v906_v35 = vpop.xlane.xlu0 %905 }
 0x32a   : > { %v914_v36 = vsub.f32 %v851_v21, %v906_v35 }
 0x32c   : > { %v919_v37 = vmul.f32 1.442695, %v914_v36 }
 0x32e   : > { %1648 = vpow2.f32 %v919_v37 }
 0x334   : > { %v1649_v38 = vpop.eup %1648 }
 0x335   : > { %v928_v39 = vsel %vm804_vm6, %v1649_v38, 0.0 }
 0x336   : > { %929 = vadd.xlane.f32.xlu2 %v928_v39 }
 0x339   : > { %v912_v40 = vpop.xlane.xlu2 %911 }
 0x33a   : > { %v916_v41 = vsub.f32 %v899_v24, %v912_v40 }
 0x33c   : > { %v923_v42 = vmul.f32 1.442695, %v916_v41 }
 0x33e   : > { %1650 = vpow2.f32 %v923_v42 }
 0x344   : > { %v1651_v43 = vpop.eup %1650 }
 0x345   : > { %v934_v44 = vsel %vm804_vm6, %v1651_v43, 0.0 }
 0x346   : > { %935 = vadd.xlane.f32.xlu2 %v934_v44 }
 0x347   : > { %v909_v45 = vpop.xlane.xlu1 %908 }
 0x348   : > { %v915_v46 = vsub.f32 %v875_v27, %v909_v45 }
 0x34a   : > { %v921_v47 = vmul.f32 1.442695, %v915_v46 }
 0x34c   : > { %1652 = vpow2.f32 %v921_v47  ;;  %v1527_v47 = vld [vmem:[#allocation5 + $0x8] sm:$0xff] }
 0x352   : > { %v1653_v48 = vpop.eup %1652 }
 0x353   : > { %v931_v49 = vsel %vm804_vm6, %v1653_v48, 0.0 }
 0x354   : > { %932 = vadd.xlane.f32.xlu0 %v931_v49 }
 0x355   : > { %v927_v50 = vpop.xlane.xlu0 %926 }
 0x356   : > { %1654 = vrcp.f32 %v927_v50 }
 0x35c   : > { %v1655_v51 = vpop.eup %1654 }
 0x35d   : > { %v941_v55 = vmul.f32 %v1655_v51, %v1647_v32  ;;  %v1535_v51 = vld [vmem:[%s2223_s15 + $0x38] sm:$0xff] }
 0x35f   : > { %v1618_v52 = vpop.permute.xlu1 %1617 }
 0x360   : > { %v1619_v53 = vunpack.i.l.bf16 %v1618_v52  ;;  %v1620_v54 = vunpack.i.h.bf16 %v1618_v52 }
 0x362   : > { %966 = vmatpush.msra.mxu2 %v1619_v53  ;;  %992 = vmatpush.msra.mxu3 %v1620_v54 }
 0x363   : > { %1469 = vmatmul.msk.f32.vlgmr.msra.gmra.mxu2 %vm804_vm6, %v941_v55  ;;  %v1533_v55 = vld [vmem:[%s2223_s15 + $0x28] sm:$0xff] }
 0x364   : > { %1071 = vmatpush.bf16.msrb.mxu2 %v1062_v61  ;;  %1090 = vmatpush.bf16.msrb.mxu3 %v1081_v12  ;;  %v1528_v12 = vld [vmem:[%s2223_s15] sm:$0xff] }
 0x368   : > { %1622 = vrot.lane.b32.xlu0 %v1621_v56, %s1821_s14  ;;  %1212 = vmatpush.bf16.msra.mxu2 %v1527_v47  ;;  %s1440_s14 = sshll.u32 %s2005_s17, 3 }
 0x369   : > { %s626_s21 = scalar_lea.vmem [#allocation7], %s1440_s14  ;;  %s1746_s14 = scalar_lea.hbm %s2254_s16, 16 }
 0x36a   : > { %s1318_s0 = sshll.u32 %s626_s21, 4  ;;  %s1319_s0 = int_to_ptr.vmem [resolvable:$true] %s1318_s0 }
 0x3a9   : > { %v930_v57 = vpop.xlane.xlu2 %929 }
 0x3aa   : > { %1656 = vrcp.f32 %v930_v57 }
 0x3b0   : > { %v1657_v58 = vpop.eup %1656 }
 0x3b1   : > { %v942_v59 = vmul.f32 %v1657_v58, %v1649_v38  ;;  %v1532_v58 = vld [vmem:[%s2223_s15 + $0x20] sm:$0xff] }
 0x3b3   : > { %1470 = vmatmul.msk.f32.vlgmr.msra.gmra.mxu3 %vm804_vm6, %v942_v59 }
 0x3b4   : > { %1289 = vmatpush.bf16.msra.mxu3 %v1535_v51 }
 0x3b9   : > { %v936_v62 = vpop.xlane.xlu2 %935 }
 0x3ba   : > { %1658 = vrcp.f32 %v936_v62 }
 0x3c0   : > { %v1659_v0 = vpop.eup %1658 }
 0x3c1   : > { %v944_v6 = vmul.f32 %v1659_v0, %v1651_v43 }
 0x3c7   : > { %v933_v63 = vpop.xlane.xlu0 %932 }
 0x3c8   : > { %1660 = vrcp.f32 %v933_v63  ;;  %v1531_v63 = vld [vmem:[%s2223_s15 + $0x18] sm:$0xff] }
 0x3ce   : > { %v1661_v1 = vpop.eup %1660 }
 0x3cf   : > { %v943_v7 = vmul.f32 %v1661_v1, %v1653_v48  ;;  %v1526_v48 = vld [vmem:[#allocation5] sm:$0xff]  ;;  %v1530_v1 = vld [vmem:[%s2223_s15 + $0x10] sm:$0xff] }
 0x3d0   : > { %1213 = vmatpush.bf16.msra.mxu2 %v1526_v48 }
 0x3da   : > { %v1623_v3 = vpop.permute.xlu0 %1622 }
 0x3db   : > { %v1625_v4 = vunpack.i.h.bf16 %v1623_v3  ;;  %v1624_v5 = vunpack.i.l.bf16 %v1623_v3  ;;  %v1632_v3 = vld [vmem:[%s2250_s1] ss:$0 sm:$0xff]  ;;  %s1519_s1 = sshll.u32 %s1804_s27, 3  ;;  %s1305_s27 = scalar_lea.sflag [#allocation4], %s2005_s17 }
 0x3dc   : > { %s1316_s20 = scalar_lea.hbm %s2254_s16, %s1519_s1 }
 0x3dd   : > { %1018 = vmatpush.msra.mxu0 %v1624_v5  ;;  %1044 = vmatpush.msra.mxu1 %v1625_v4 }
 0x3de   : > { %1471 = vmatmul.msk.f32.vlgmr.msra.gmra.mxu0 %vm804_vm6, %v943_v7  ;;  %1472 = vmatmul.msk.f32.vlgmr.msra.gmra.mxu1 %vm804_vm6, %v944_v6  ;;  %v1633_v6 = vld [vmem:[%s2251_s30] ss:$0 sm:$0xff]  ;;  %s2253_s30 = sld [smem:[#allocation20_spill]] }
 0x3df   : > { %1109 = vmatpush.bf16.msrb.mxu0 %v1100_v17  ;;  %1128 = vmatpush.bf16.msrb.mxu1 %v1119_v18 }
 0x3e6   : > { %v968_v8 = vpop.f32.mrf.mxu2 }
 0x3e7   : > { %v1049_v9 = vpack.c.bf16 %v968_v8, %v968_v8 }
 0x3e9   : > { %1473 = vmatmul.msk.bf16.vlgmr.msrb.gmra.mxu2 %vm804_vm6, %v1049_v9 }
 0x436   : > { %v994_v13 = vpop.f32.mrf.mxu3 }
 0x437   : > { %v1050_v14 = vpack.c.bf16 %v994_v13, %v994_v13  ;;  %v1634_v13 = vld [vmem:[%s2252_s22] ss:$0 sm:$0xff]  ;;  %s1320_s22 = sshll.u32 %s1316_s20, 4  ;;  %s1321_s22 = int_to_ptr.hbm [resolvable:$true] %s1320_s22 }
 0x438   : > { %s1740_s2 = sshra.s32 %s1321_s22, 4  ;;  %s1741_s2 = int_to_ptr.hbm [resolvable:$true] %s1740_s2 }
 0x439   : > { %1474 = vmatmul.msk.bf16.vlgmr.msrb.gmra.mxu3 %vm804_vm6, %v1050_v14  ;;  %s1742_s19 = scalar_lea.hbm %s1741_s2, 8  ;;  %p1747_p11 = scmp.lt.s32.totalorder %s1741_s2, %s2254_s16 }
 0x43a   : > { %p1743_p1 = scmp.ne.s32.totalorder %s1741_s2, %s1742_s19  ;;  %p1748_p12 = scmp.lt.s32.totalorder %s1746_s14, %s1742_s19 }
 0x43c   : > { %p1744_p9 = pnand %p1743_p1, %p1983_p4  ;;  %p1749_p13 = por %p1748_p12, %p1747_p11 }
 0x43e   : > { %p1745_p10 = pneg %p1744_p9 }
 0x440   : > { %p1750_p0 = pnand %p1749_p13, %p1745_p10 }
 0x45b   : > { %v1020_v19 = vpop.f32.mrf.mxu0  ;;  %v1046_v20 = vpop.f32.mrf.mxu1 }
 0x45c   : > { %v1051_v21 = vpack.c.bf16 %v1020_v19, %v1020_v19  ;;  %v1052_v22 = vpack.c.bf16 %v1046_v20, %v1046_v20  ;;  %v1635_v19 = vld [vmem:[%s2253_s30] ss:$0 sm:$0xff] }
 0x45e   : > { %1475 = vmatmul.msk.bf16.vlgmr.msrb.gmra.mxu0 %vm804_vm6, %v1051_v21  ;;  %1476 = vmatmul.msk.bf16.vlgmr.msrb.gmra.mxu1 %vm804_vm6, %v1052_v22 }
 0x46c   : > { %v1073_v23 = vpop.f32.mrf.mxu2 }
 0x46d   : > { %v1134_v28 = vsel %vm644_vm0, %v1073_v23, 0.0 }
 0x474   : > { %v1075_v24 = vpop.f32.mrf.mxu2 }
 0x4bc   : > { %v1092_v25 = vpop.f32.mrf.mxu3 }
 0x4bd   : > { %v1135_v27 = vsel %vm644_vm0, %v1092_v25, 0.0 }
 0x4be   : > { %v1136_v29 = vadd.f32 %v1135_v27, %v1134_v28 }
 0x4c4   : > { %v1094_v26 = vpop.f32.mrf.mxu3 }
 0x4db   : > { %v1111_v30 = vpop.f32.mrf.mxu0  ;;  %v1130_v31 = vpop.f32.mrf.mxu1 }
 0x4dc   : > { %v1137_v32 = vsel %vm644_vm0, %v1111_v30, 0.0  ;;  %v1139_v35 = vsel %vm644_vm0, %v1130_v31, 0.0 }
 0x4dd   : > { %v1138_v33 = vadd.f32 %v1137_v32, %v1136_v29 }
 0x4df   : > { %v1140_v36 = vadd.f32 %v1139_v35, %v1138_v33 }
 0x4e1   : > { %v1145_v37 = vadd.f32 %v1631_v34, %v1140_v36 }
 0x4e3   : > { %v1113_v38 = vpop.f32.mrf.mxu0  ;;  %v1132_v39 = vpop.f32.mrf.mxu1  ;;  %v2123_v40 = vadd.f32 %v1145_v37, %v2026_v2 }
 0x4e5   : > { %v1149_v41 = vsel %vm644_vm0, %v2123_v40, 0.0 }
 0x4e6   : > { %1150 = vadd.xlane.f32.xlu2 %v1149_v41 }
 0x559   : > { %v1151_v42 = vpop.xlane.xlu2 %1150 }
 0x55a   : > { %v1152_v43 = vmul.f32 %v1151_v42, %v2030_v10  ;;  %v1534_v10 = vld [vmem:[%s2223_s15 + $0x30] sm:$0xff] }
 0x55b   : > { %1290 = vmatpush.bf16.msra.mxu3 %v1534_v10 }
 0x55c   : > { %v1153_v44 = vsub.f32 %v2123_v40, %v1152_v43 }
 0x55e   : > { %v1154_v45 = vmul.f32 %v1153_v44, %v1153_v44 }
 0x55f   : > { %1291 = vmatpush.bf16.msra.mxu3 %v1533_v55 }
 0x560   : > { %v1155_v46 = vsel %vm644_vm0, %v1154_v45, 0.0 }
 0x561   : > { %1156 = vadd.xlane.f32.xlu2 %v1155_v46 }
 0x563   : > { %1292 = vmatpush.bf16.msra.mxu3 %v1532_v58 }
 0x567   : > { %1293 = vmatpush.bf16.msra.mxu3 %v1531_v63 }
 0x56b   : > { %1294 = vmatpush.bf16.msra.mxu3 %v1530_v1 }
 0x56f   : > { %1295 = vmatpush.bf16.msra.mxu3 %v1529_v11 }
 0x573   : > { %1296 = vmatpush.bf16.msra.mxu3 %v1528_v12 }
 0x5d4   : > { %v1157_v49 = vpop.xlane.xlu2 %1156 }
 0x5d5   : > { %v1158_v2 = vmul.f32 0.032258064, %v1157_v49 }
 0x5d7   : > { %1662 = vrsqrt.f32 %v1158_v2  ;;  %vm1166_vm8 = vcmp.eq.f32.partialorder %v1158_v2, inf  ;;  %v1169_v60 = vand.u32 2147483648, %v1158_v2  ;;  %vm1168_vm9 = vcmp.eq.f32.partialorder %v1158_v2, 0.0 }
 0x5dd   : > { %v1663_v50 = vpop.eup %1662 }
 0x5de   : > { %v1160_v52 = vmul.f32 %v1663_v50, %v1158_v2 }
 0x5e0   : > { %v1161_v53 = vmul.f32 %v1663_v50, %v1160_v52 }
 0x5e2   : > { %v1162_v54 = vmul.f32 0.5, %v1161_v53 }
 0x5e4   : > { %v1163_v56 = vsub.f32 1.5, %v1162_v54 }
 0x5e6   : > { %v1164_v57 = vmul.f32 %v1663_v50, %v1163_v56 }
 0x5e8   : > { %v1165_v59 = vmul.f32 %v1164_v57, %v1158_v2 }
 0x5ea   : > { %v1167_v61 = vsel %vm1166_vm8, %v1158_v2, %v1165_v59 }
 0x5eb   : > { %v1170_v62 = vsel %vm1168_vm9, %v1169_v60, %v1167_v61 }
 0x5ec   : > { %v1171_v0 = vadd.f32 1e-06, %v1170_v62 }
 0x5ee   : > { %1664 = vrcp.f32 %v1171_v0 }
 0x5f4   : > { %v1665_v4 = vpop.eup %1664 }
 0x5f5   : > { %v1173_v5 = vmul.f32 %v1665_v4, %v1153_v44 }
 0x5f7   : > { %v1177_v7 = vmul.f32 %v1632_v3, %v1173_v5 }
 0x5f9   : > { %v1181_v8 = vadd.f32 %v1633_v6, %v1177_v7 }
 0x5fb   : > { %v1182_v9 = vpack.c.bf16 %v1181_v8, %v1181_v8 }
 0x5fd   : > { %1485 = vmatmul.msk.bf16.vlgmr.msra.gmra.mxu2 %vm644_vm0, %v1182_v9 }
 0x680   : > { %v1215_v14 = vpop.f32.mrf.mxu2 }
 0x681   : > { %v1216_v15 = vadd.f32 %v1634_v13, %v1215_v14 }
 0x683   : > { %v1219_v16 = vmax.f32 %v1216_v15, 0.0 }
 0x685   : > { %v1220_v17 = vpack.c.bf16 %v1219_v16, %v1219_v16 }
 0x687   : > { %1297 = vmatmul.bf16.vlgmr.msra.gmra.mxu3 %v1220_v17 }
 0x688   : > { %v1217_v18 = vpop.f32.mrf.mxu2 }
 0x70a   : > { %v1298_v20 = vpop.f32.mrf.mxu3 }
 0x70b   : > { %v1299_v21 = vadd.f32 %v1635_v19, %v1298_v20 }
 0x70d   : > { %v1302_v22 = vadd.f32 %v1299_v21, %v2123_v40 }
 0x70f   : > { %1303 = vst.msk [vmem:[%s626_s21] sm:$0xff] %vm644_vm0, %v1302_v22 }
 0x710   : > { %1753 = shalt.err (!%p1750_p0)
}
 0x711   : > { %1542 = dma.vmem_to_hbm [thread:$0]  (%p1983_p4), %s1319_s0, 128, %s1321_s22, %s1305_s27  }
 0x712   : > { %v1300_v23 = vpop.f32.mrf.mxu3 }
 0x713 PF: > { %s2255_s17 = sld [smem:[#allocation11_spill]]  ;;  %p1553_p2 = pnand %p1437_p6, %p1991_p7 }
 0x715   : > { %p1554_p5 = pneg %p1553_p2 }
 0x719   : > { %s1332_s13 = sand.u32 1, %s2255_s17  }
 0x71a   : > { %s1333_s20 = scalar_lea.sflag [#allocation4], %s1332_s13 }
 0x71b   : > { %1787 = dma.done.wait (%p1554_p5), %s1333_s20, 128  }
 0x71c   : > { %1789 = vsyncadd (%p1554_p5), %s1333_s20, 4294967168  ;;  %s34_s29 = sadd.s32 1, %s1812_s29   ;;  %s2256_s2 = sld [smem:[#allocation12_spill]] }
 0x71d   : > { %p31_p8 = scmp.ge.s32.totalorder %s34_s29, 4   ;;  %s2257_s24 = smov %s1796_s25 }
 0x71e   : > { %s2258_s25 = smov %s1800_s26  ;;  %s2259_s26 = smov %s1989_s18 }
 0x71f   : > { %s2260_s27 = smov %s1808_s28  ;;  %33 = sbr.rel (!%p31_p8) target bundleno = 17 (0x11), region = 143 }
 0x722   : > { %s2261_s28 = smov %s2256_s2 }
 0x724   :  { %1339 = vsyncpa [#allocation3], 1 }
 0x725   :  { %1341 = vsyncpa [#allocation3 + $0x1], 1 }
 0x726   :  { %1342 = vsyncpa [#allocation6], 1 }
 0x727   :  { %1343 = vsyncpa [#allocation4], 1 }
 0x728   :  { %1345 = vsyncpa [#allocation4 + $0x1], 1 }

// kernel: tpu_custom_call.1
= control target key start
LH: loop header
LB: loop body
LE: loop exit
PB: predicated region body
PF: predicated region fallthrough
CT: control target
= control target key end

     0   :  { %s2208_s0 = inlined_call_operand.vmem [shape: f32[2,8,32], index: 0, kind: input, shape index: {}]   ;;  %s2209_s1 = inlined_call_operand.vmem [shape: f32[2,8,32], index: 1, kind: input, shape index: {}]   ;;  %s2210_s2 = inlined_call_operand.hbm [shape: f32[2,1,8], index: 2, kind: input, shape index: {}]   ;;  %s2211_s3 = inlined_call_operand.vmem [shape: bf16[32,32], index: 3, kind: input, shape index: {}]   ;;  %s2212_s4 = inlined_call_operand.vmem [shape: f32[1,32], index: 4, kind: input, shape index: {}]   ;;  %s2213_s5 = inlined_call_operand.vmem [shape: bf16[32,64], index: 5, kind: input, shape index: {}]   ;;  %s2214_s6 = inlined_call_operand.vmem [shape: f32[1,64], index: 6, kind: input, shape index: {}]   ;;  %s2215_s7 = inlined_call_operand.vmem [shape: bf16[4,8,32], index: 7, kind: input, shape index: {}]   ;;  %s2216_s8 = inlined_call_operand.vmem [shape: f32[1,32], index: 8, kind: input, shape index: {}]   ;;  %s2217_s9 = inlined_call_operand.vmem [shape: f32[1,32], index: 9, kind: input, shape index: {}]   ;;  %s2218_s10 = inlined_call_operand.vmem [shape: f32[1,32], index: 10, kind: input, shape index: {}]   ;;  %s2219_s11 = inlined_call_operand.vmem [shape: f32[1,32], index: 11, kind: input, shape index: {}]   ;;  %s2220_s12 = inlined_call_operand.vmem [shape: f32[1,32], index: 12, kind: input, shape index: {}]   ;;  %s2221_s13 = inlined_call_operand.hbm [shape: bf16[32,128], index: 13, kind: input, shape index: {}]   ;;  %s2222_s14 = inlined_call_operand.vmem [shape: f32[1,128], index: 14, kind: input, shape index: {}]   ;;  %s2223_s15 = inlined_call_operand.vmem [shape: bf16[128,32], index: 15, kind: input, shape index: {}]   ;;  %s2224_s16 = inlined_call_operand.vmem [shape: f32[1,32], index: 16, kind: input, shape index: {}]   ;;  %s2225_s17 = inlined_call_operand.hbm [shape: f32[2,8,32], index: 17, kind: output, shape index: {}]  }
   0x1   :  { %2229 = sst [smem:[#allocation13_spill]] %s2208_s0 }
   0x2   :  { %2230 = sst [smem:[#allocation14_spill]] %s2209_s1 }
   0x3   :  { %2231 = sst [smem:[#allocation15_spill]] %s2210_s2 }
   0x4   :  { %2232 = sst [smem:[#allocation16_spill]] %s2219_s11 }
   0x5   :  { %2233 = sst [smem:[#allocation17_spill]] %s2220_s12 }
   0x6   :  { %2234 = sst [smem:[#allocation18_spill]] %s2221_s13 }
   0x7   :  { %2235 = sst [smem:[#allocation19_spill]] %s2222_s14 }
   0x8   :  { %2236 = sst [smem:[#allocation20_spill]] %s2224_s16 }
   0x9   :  { %2237 = sst [smem:[#allocation21_spill]] %s2225_s17 }
   0xa   :  { %22 = vsyncpa [#allocation3], 0 }
   0xb   :  { %24 = vsyncpa [#allocation3 + $0x1], 0 }
   0xc   :  { %25 = vsyncpa [#allocation6], 0 }
   0xd   :  { %26 = vsyncpa [#allocation4], 0 }
   0xe   :  { %28 = vsyncpa [#allocation4 + $0x1], 0  ;;  %s1912_s24 = smov 0   ;;  %s1914_s25 = smov 0  }
   0xf   :  { %s1916_s26 = smov 0   ;;  %s1918_s27 = smov 0  }
  0x10   :  { %s1920_s28 = smov 0   ;;  %s1922_s29 = smov 0  }
  0x11 LB: > { %2238 = sst [smem:[#allocation11_spill]] %s1792_s24  ;;  %s1433_s0 = sadd.s32 4294967295, %s1812_s29   ;;  %s1812_s29 = sphi %s1922_s29, %s34_s29   ;;  %s1808_s28 = sphi %s1920_s28, %s2261_s28   ;;  %s1804_s27 = sphi %s1918_s27, %s2260_s27   ;;  %s1800_s26 = sphi %s1916_s26, %s2259_s26   ;;  %s1796_s25 = sphi %s1914_s25, %s2258_s25   ;;  %s1792_s24 = sphi %s1912_s24, %s2257_s24  }
  0x12   : > { %p1435_p0 = scmp.ge.s32.totalorder %s1812_s29, 1  ;;  %p1944_p1 = scmp.eq.s32.totalorder %s1433_s0, 0 }
  0x13   : > { %p453_p2 = scmp.lt.s32.totalorder %s1812_s29, 3  ;;  %s2240_s13 = sld [smem:[#allocation18_spill]] }
  0x14   : > { %s1814_s21 = smov [#allocation5]   ;;  %p1437_p6 = scmp.ge.s32.totalorder %s1812_s29, 2 }
  0x15   : > { %p1952_p3 = pnand %p1435_p0, %p453_p2  ;;  %s496_s22 = sshll.u32 %s1814_s21, 4  ;;  %s497_s22 = int_to_ptr.vmem [resolvable:$true] %s496_s22 }
  0x16   : > { %s1815_s23 = smov 64   ;;  %s1816_s18 = smov 4  }
  0x17   : > { %p1544_p4 = pneg %p1952_p3  ;;  %s1434_s19 = sadd.s32 4294967294, %s1812_s29  }
  0x18   : > { %s107_s17 = sadd.s32 1, %s1800_s26  ;;  %p114_p8 = scmp.ne.s32.totalorder %s1800_s26, %s1796_s25 }
  0x19   : > { %s494_s1 = sshll.u32 %s2240_s13, 4  ;;  %p1545_p5 = pnand %p1544_p4, %p1944_p1  ;;  %s495_s1 = int_to_ptr.hbm [resolvable:$true] %s494_s1 }
  0x1a   : > { %s46_s13 = sadd.s32 1, %s1808_s28  ;;  %p115_p9 = scmp.eq.s32.totalorder %s1812_s29, 0 }
  0x1b   : > { %1547 = dma.hbm_to_vmem [thread:$0]  (!%p1545_p5), %s495_s1, 256, %s497_s22, [#allocation6], %s1815_s23, %s1815_s23, %s1816_s18  }
  0x1c   : > { %p48_p7 = scmp.ge.s32.totalorder %s46_s13, 2  ;;  %p120_p10 = scmp.ne.s32.totalorder %s1796_s25, %s1792_s24 }
  0x1d   : > { %p1971_p11 = por %p115_p9, %p114_p8  ;;  %p440_p13 = scmp.eq.s32.totalorder %s1433_s0, 1 }
  0x1e   : > { %s2263_s13 = smov (%p48_p7, %s46_s13), 0  ;;  %p1977_p12 = por %p1944_p1, %p120_p10 }
  0x1f   : > { %2242 = sst [smem:[#allocation12_spill]] %s2263_s13  ;;  %s104_s22 = ssub.s32 %s1808_s28, %s2263_s13 }
  0x20   : > { %p105_p0 = scmp.eq.s32.totalorder %s104_s22, 0  ;;  %p446_p2 = scmp.eq.s32.totalorder %s1434_s19, 1 }
  0x21   : > { %p1983_p4 = por %p440_p13, %p114_p8  ;;  %p1557_p5 = scmp.lt.s32.totalorder %s1812_s29, 2 }
  0x22   : > { %s1989_s18 = scalar_select %p105_p0, %s1800_s26, %s107_s17  }
  0x23   : > { %p1991_p7 = por %p446_p2, %p120_p10  ;;  %s536_s16 = sand.u32 1, %s1800_s26  }
  0x24   : > { %s2247_s2 = sld [smem:[#allocation15_spill]]  ;;  %s539_s13 = scalar_lea.vmem [#allocation2], %s536_s16 }
  0x25   : > { %s546_s0 = sshll.u32 %s539_s13, 4  ;;  %p1549_p8 = pnand %p1557_p5, %p1971_p11  ;;  %s547_s0 = int_to_ptr.vmem [resolvable:$true] %s546_s0 }
  0x26   : > { %s537_s19 = scalar_lea.sflag [#allocation3], %s536_s16  ;;  %s2005_s17 = sand.u32 (!%p1952_p3), 1, %s1796_s25  }
  0x27   : > { %s558_s12 = scalar_lea.sflag (!%p1952_p3), [#allocation3], %s2005_s17  ;;  %s560_s14 = scalar_lea.vmem (!%p1952_p3), [#allocation2], %s2005_s17 }
  0x28   : > { %555 = sbr.rel (%p1952_p3) target bundleno = 1811 (0x713), region = 88 }
  0x2a   : > { %s542_s11 = scalar_lea.hbm %s2247_s2, %s1808_s28 }
  0x2b   : > { %s544_s22 = sshll.u32 %s542_s11, 4  ;;  %s545_s22 = int_to_ptr.hbm [resolvable:$true] %s544_s22 }
  0x2c   : > { %1551 = dma.hbm_to_vmem [thread:$0]  (!%p1549_p8), %s545_s22, 16, %s547_s0, %s537_s19  }
  0x2d   : > { %1779 = dma.done.wait (%p1977_p12), %s558_s12, 16  }
  0x2e   : > { %1781 = vsyncadd (%p1977_p12), %s558_s12, 4294967280 }
  0x2f   : > { %1783 = dma.done.wait (%p1944_p1), [#allocation6], 256  }
  0x30   : > { %1785 = vsyncadd (%p1944_p1), [#allocation6], 4294967040  ;;  %p627_p3 = scmp.lt.s32.totalorder %s1804_s27, 1  ;;  %s2248_s21 = sld [smem:[#allocation14_spill]]  ;;  %vm644_vm0 = vcmask 261120   ;;  %v1817_v4 = vmov 32.0  }
  0x31   : > { %s2249_s19 = sld [smem:[#allocation13_spill]]  ;;  %1636 = vrcp.f32 %v1817_v4  ;;  %v1525_v21 = vld [vmem:[%s2213_s5 + $0x8] sm:$0xff]  ;;  %v1524_v22 = vld [vmem:[%s2213_s5] sm:$0xff]  ;;  %vm804_vm6 = vcmask 64512   ;;  %s1818_s16 = smov 120   ;;  %vm1060_vm7 = vcmask 1043456  }
  0x32   : > { %s628_s11 = scalar_select %p627_p3, %s1804_s27, 1  ;;  %780 = vmatpush.bf16.msra.mxu1 %v1525_v21  ;;  %v1523_v26 = vld [vmem:[%s2211_s3 + $0x8] sm:$0xff]  ;;  %v1522_v30 = vld [vmem:[%s2211_s3] sm:$0xff] }
  0x33   : > { %742 = vmatpush.bf16.msra.mxu0 %v1523_v26  ;;  %v1626_v49 = vld [vmem:[%s2217_s9] ss:$0 sm:$0xff]  ;;  %s1819_s20 = smov 112   ;;  %s1820_s22 = smov 104  }
  0x34   : > { %s1441_s13 = sshll.u32 %s628_s11, 3  ;;  %v1627_v53 = vld [vmem:[%s2218_s10] ss:$0 sm:$0xff]  ;;  %s2250_s1 = sld [smem:[#allocation16_spill]] }
  0x35   : > { %v1628_v63 = vld [vmem:[%s2214_s6] ss:$0 sm:$0xff]  ;;  %s2251_s30 = sld [smem:[#allocation17_spill]] }
  0x36   : > { %s637_s0 = scalar_lea.vmem %s2248_s21, %s1441_s13  ;;  %781 = vmatpush.bf16.msra.mxu1 %v1524_v22 }
  0x37   : > { %v640_v0 = vld [vmem:[%s637_s0] sm:$0xff]  ;;  %s633_s12 = scalar_lea.vmem %s2249_s19, %s1441_s13  ;;  %v1637_v5 = vpop.eup %1636  ;;  %743 = vmatpush.bf16.msra.mxu0 %v1522_v30 }
  0x38   : > { %v685_v1 = vsel %vm644_vm0, %v640_v0, 0.0  ;;  %v2026_v2 = vld [vmem:[%s633_s12] sm:$0xff]  ;;  %v649_v6 = vmul.f32 32.0, %v1637_v5  ;;  %vm653_vm1 = vweird.f32 %v1637_v5 }
  0x39   : > { %686 = vadd.xlane.f32.xlu0 %v685_v1  ;;  %v645_v3 = vsel %vm644_vm0, %v2026_v2, 0.0 }
  0x3a   : > { %v650_v7 = vsub.f32 1.0, %v649_v6 }
  0x3c   : > { %v651_v8 = vmul.f32 %v1637_v5, %v650_v7 }
  0x3e   : > { %v652_v9 = vadd.f32 %v1637_v5, %v651_v8 }
  0x40   : > { %v2030_v10 = vsel %vm653_vm1, %v1637_v5, %v652_v9 }
  0x41   : > { %646 = vadd.xlane.f32.xlu0 %v645_v3  ;;  %v1629_v3 = vld [vmem:[%s2212_s4] ss:$0 sm:$0xff] }
  0xac   : > { %v687_v11 = vpop.xlane.xlu0 %686 }
  0xad   : > { %v688_v12 = vmul.f32 %v687_v11, %v2030_v10 }
  0xaf   : > { %v689_v13 = vsub.f32 %v640_v0, %v688_v12 }
  0xb1   : > { %v690_v14 = vmul.f32 %v689_v13, %v689_v13 }
  0xb3   : > { %v691_v15 = vsel %vm644_vm0, %v690_v14, 0.0 }
  0xb4   : > { %692 = vadd.xlane.f32.xlu1 %v691_v15  ;;  %v647_v16 = vpop.xlane.xlu0 %646 }
  0xb5   : > { %v655_v17 = vmul.f32 %v2030_v10, %v647_v16  ;;  %v1630_v16 = vld [vmem:[%s560_s14] ss:$0 sm:$0xff]  ;;  %s1821_s14 = smov 96  }
  0xb7   : > { %v656_v18 = vsub.f32 %v2026_v2, %v655_v17 }
  0xb9   : > { %v657_v19 = vmul.f32 %v656_v18, %v656_v18 }
  0xbb   : > { %v658_v20 = vsel %vm644_vm0, %v657_v19, 0.0 }
  0xbc   : > { %659 = vadd.xlane.f32.xlu1 %v658_v20 }
 0x127   : > { %v693_v23 = vpop.xlane.xlu1 %692 }
 0x128   : > { %v694_v24 = vmul.f32 0.032258064, %v693_v23 }
 0x12a   : > { %1638 = vrsqrt.f32 %v694_v24  ;;  %vm702_vm2 = vcmp.eq.f32.partialorder %v694_v24, inf  ;;  %v705_v39 = vand.u32 2147483648, %v694_v24  ;;  %vm704_vm3 = vcmp.eq.f32.partialorder %v694_v24, 0.0 }
 0x12f   : > { %v660_v25 = vpop.xlane.xlu1 %659 }
 0x130   : > { %v1639_v27 = vpop.eup %1638  ;;  %v661_v28 = vmul.f32 0.032258064, %v660_v25 }
 0x131   : > { %v696_v29 = vmul.f32 %v1639_v27, %v694_v24 }
 0x132   : > { %1640 = vrsqrt.f32 %v661_v28  ;;  %vm669_vm4 = vcmp.eq.f32.partialorder %v661_v28, inf  ;;  %v672_v47 = vand.u32 2147483648, %v661_v28  ;;  %vm671_vm5 = vcmp.eq.f32.partialorder %v661_v28, 0.0 }
 0x133   : > { %v697_v31 = vmul.f32 %v1639_v27, %v696_v29 }
 0x135   : > { %v698_v32 = vmul.f32 0.5, %v697_v31 }
 0x137   : > { %v699_v33 = vsub.f32 1.5, %v698_v32 }
 0x138   : > { %v1641_v34 = vpop.eup %1640 }
 0x139   : > { %v663_v35 = vmul.f32 %v1641_v34, %v661_v28  ;;  %v700_v36 = vmul.f32 %v1639_v27, %v699_v33 }
 0x13b   : > { %v664_v37 = vmul.f32 %v1641_v34, %v663_v35  ;;  %v701_v38 = vmul.f32 %v700_v36, %v694_v24 }
 0x13d   : > { %v703_v40 = vsel %vm702_vm2, %v694_v24, %v701_v38  ;;  %v665_v41 = vmul.f32 0.5, %v664_v37 }
 0x13e   : > { %v706_v42 = vsel %vm704_vm3, %v705_v39, %v703_v40 }
 0x13f   : > { %v707_v43 = vadd.f32 1e-06, %v706_v42  ;;  %v666_v44 = vsub.f32 1.5, %v665_v41 }
 0x141   : > { %1642 = vrcp.f32 %v707_v43  ;;  %v667_v45 = vmul.f32 %v1641_v34, %v666_v44 }
 0x143   : > { %v668_v46 = vmul.f32 %v667_v45, %v661_v28 }
 0x145   : > { %v670_v48 = vsel %vm669_vm4, %v661_v28, %v668_v46 }
 0x146   : > { %v673_v50 = vsel %vm671_vm5, %v672_v47, %v670_v48 }
 0x147   : > { %v1643_v51 = vpop.eup %1642  ;;  %v674_v52 = vadd.f32 1e-06, %v673_v50 }
 0x148   : > { %v709_v54 = vmul.f32 %v1643_v51, %v689_v13 }
 0x149   : > { %1644 = vrcp.f32 %v674_v52 }
 0x14a   : > { %v710_v55 = vmul.f32 %v1626_v49, %v709_v54 }
 0x14c   : > { %v711_v56 = vadd.f32 %v1627_v53, %v710_v55 }
 0x14e   : > { %v750_v57 = vpack.c.bf16 %v711_v56, %v711_v56 }
 0x14f   : > { %v1645_v58 = vpop.eup %1644 }
 0x150   : > { %1460 = vmatmul.msk.bf16.vlgmr.msra.gmra.mxu1 %vm644_vm0, %v750_v57  ;;  %v676_v59 = vmul.f32 %v1645_v58, %v656_v18 }
 0x152   : > { %v680_v60 = vmul.f32 %v1626_v49, %v676_v59 }
 0x154   : > { %v684_v61 = vadd.f32 %v1627_v53, %v680_v60  ;;  %v1053_v60 = vld [vmem:[%s2215_s7] sm:$0xf] }
 0x156   : > { %v712_v62 = vpack.c.bf16 %v684_v61, %v684_v61  ;;  %v1062_v61 = vsel %vm1060_vm7, %v1053_v60, 0 }
 0x158   : > { %1451 = vmatmul.msk.bf16.vlgmr.msra.gmra.mxu0 %vm644_vm0, %v712_v62 }
 0x1cd   : > { %v783_v0 = vpop.f32.mrf.mxu1 }
 0x1ce   : > { %v784_v1 = vadd.f32 %v1628_v63, %v783_v0 }
 0x1d0   : > { %795 = vrot.lane.b32.xlu2 %v784_v1, %s1818_s16  ;;  %1461 = vmatpush.xpose.msk.msra.mxu2 %vm804_vm6, %v784_v1 }
 0x1d1   : > { %797 = vrot.lane.b32.xlu0 %v784_v1, %s1819_s20 }
 0x1d5   : > { %v745_v4 = vpop.f32.mrf.mxu0  ;;  %v785_v5 = vpop.f32.mrf.mxu1 }
 0x1d6   : > { %v746_v6 = vadd.f32 %v1629_v3, %v745_v4 }
 0x1d8   : > { %v749_v7 = vmul.f32 0.35355338, %v746_v6 }
 0x1da   : > { %790 = vrot.lane.b32.xlu1 %v749_v7, %s1819_s20  ;;  %788 = vrot.lane.b32.xlu2 %v749_v7, %s1818_s16  ;;  %s2254_s16 = sld [smem:[#allocation21_spill]] }
 0x1db   : > { %1462 = vmatmul.msk.f32.vlgmr.msra.gmra.mxu2 %vm804_vm6, %v749_v7 }
 0x1dd   : > { %v747_v8 = vpop.f32.mrf.mxu0 }
 0x1e2   : > { %799 = vrot.lane.b32.xlu2 %v784_v1, %s1820_s22 }
 0x1ea   : > { %792 = vrot.lane.b32.xlu2 %v749_v7, %s1820_s22  ;;  %s2252_s22 = sld [smem:[#allocation19_spill]] }
 0x22a   : > { %v796_v9 = vpop.permute.xlu2 %795 }
 0x22b   : > { %1463 = vmatpush.xpose.msk.msrb.mxu0 %vm804_vm6, %v796_v9  ;;  %v1616_v34 = vpack.i.bf16 %v796_v9, %v784_v1 }
 0x234   : > { %v789_v11 = vpop.permute.xlu2 %788 }
 0x235   : > { %1464 = vmatmul.msk.f32.vlgmr.msrb.gmra.mxu0 %vm804_vm6, %v789_v11  ;;  %v1054_v11 = vld [vmem:[%s2215_s7 + $0x4] sm:$0xf] }
 0x23c   : > { %v2067_v12 = vpop.permute.xlu2 %799 }
 0x23d   : > { %1467 = vmatpush.xpose.msk.msrb.mxu1 %vm804_vm6, %v2067_v12 }
 0x243   : > { %v2071_v13 = vpop.permute.xlu0 %797 }
 0x244   : > { %1465 = vmatpush.xpose.msk.msrb.mxu2 %vm804_vm6, %v2071_v13  ;;  %v793_v14 = vpop.permute.xlu2 %792  ;;  %v1621_v56 = vpack.i.bf16 %v2067_v12, %v2071_v13  ;;  %v1081_v12 = vsel %vm1060_vm7, %v1054_v11, 0  ;;  %v1529_v11 = vld [vmem:[%s2223_s15 + $0x8] sm:$0xff] }
 0x245   : > { %1468 = vmatmul.msk.f32.vlgmr.msrb.gmra.mxu1 %vm804_vm6, %v793_v14 }
 0x24c   : > { %v791_v15 = vpop.permute.xlu1 %790 }
 0x24d   : > { %1466 = vmatmul.msk.f32.vlgmr.msrb.gmra.mxu2 %vm804_vm6, %v791_v15  ;;  %v1055_v15 = vld [vmem:[%s2215_s7 + $0x8] sm:$0xf] }
 0x25e   : > { %v826_v17 = vpop.f32.mrf.mxu2 }
 0x25f   : > { %v827_v18 = vadd.f32 %v1630_v16, %v826_v17  ;;  %v1100_v17 = vsel %vm1060_vm7, %v1055_v15, 0 }
 0x261   : > { %v901_v19 = vsel %vm804_vm6, %v827_v18, -inf }
 0x262   : > { %902 = vmax.xlane.f32.xlu2 %v901_v19 }
 0x2b2   : > { %v850_v20 = vpop.f32.mrf.mxu0 }
 0x2b3   : > { %v851_v21 = vadd.f32 %v1630_v16, %v850_v20 }
 0x2b5   : > { %v904_v22 = vsel %vm804_vm6, %v851_v21, -inf }
 0x2b6   : > { %905 = vmax.xlane.f32.xlu0 %v904_v22 }
 0x2c2   : > { %v898_v23 = vpop.f32.mrf.mxu1 }
 0x2c3   : > { %v899_v24 = vadd.f32 %v1630_v16, %v898_v23 }
 0x2c5   : > { %v910_v25 = vsel %vm804_vm6, %v899_v24, -inf }
 0x2c6   : > { %911 = vmax.xlane.f32.xlu2 %v910_v25 }
 0x2d0   : > { %v874_v26 = vpop.f32.mrf.mxu2 }
 0x2d1   : > { %v875_v27 = vadd.f32 %v1630_v16, %v874_v26  ;;  %v1056_v16 = vld [vmem:[%s2215_s7 + $0xc] sm:$0xf] }
 0x2d3   : > { %v907_v28 = vsel %vm804_vm6, %v875_v27, -inf }
 0x2d4   : > { %908 = vmax.xlane.f32.xlu1 %v907_v28 }
 0x2d5   : > { %v903_v29 = vpop.xlane.xlu2 %902 }
 0x2d6   : > { %v913_v30 = vsub.f32 %v827_v18, %v903_v29  ;;  %v1119_v18 = vsel %vm1060_vm7, %v1056_v16, 0 }
 0x2d8   : > { %v917_v31 = vmul.f32 1.442695, %v913_v30 }
 0x2da   : > { %1646 = vpow2.f32 %v917_v31 }
 0x2e0   : > { %v1647_v32 = vpop.eup %1646 }
 0x2e1   : > { %v925_v33 = vsel %vm804_vm6, %v1647_v32, 0.0 }
 0x2e2   : > { %926 = vadd.xlane.f32.xlu0 %v925_v33 }
 0x2ed   : > { %1617 = vrot.lane.b32.xlu1 %v1616_v34, %s1821_s14  ;;  %v1631_v34 = vld [vmem:[%s2216_s8] ss:$0 sm:$0xff] }
 0x329   : > { %v906_v35 = vpop.xlane.xlu0 %905 }
 0x32a   : > { %v914_v36 = vsub.f32 %v851_v21, %v906_v35 }
 0x32c   : > { %v919_v37 = vmul.f32 1.442695, %v914_v36 }
 0x32e   : > { %1648 = vpow2.f32 %v919_v37 }
 0x334   : > { %v1649_v38 = vpop.eup %1648 }
 0x335   : > { %v928_v39 = vsel %vm804_vm6, %v1649_v38, 0.0 }
 0x336   : > { %929 = vadd.xlane.f32.xlu2 %v928_v39 }
 0x339   : > { %v912_v40 = vpop.xlane.xlu2 %911 }
 0x33a   : > { %v916_v41 = vsub.f32 %v899_v24, %v912_v40 }
 0x33c   : > { %v923_v42 = vmul.f32 1.442695, %v916_v41 }
 0x33e   : > { %1650 = vpow2.f32 %v923_v42 }
 0x344   : > { %v1651_v43 = vpop.eup %1650 }
 0x345   : > { %v934_v44 = vsel %vm804_vm6, %v1651_v43, 0.0 }
 0x346   : > { %935 = vadd.xlane.f32.xlu2 %v934_v44 }
 0x347   : > { %v909_v45 = vpop.xlane.xlu1 %908 }
 0x348   : > { %v915_v46 = vsub.f32 %v875_v27, %v909_v45 }
 0x34a   : > { %v921_v47 = vmul.f32 1.442695, %v915_v46 }
 0x34c   : > { %1652 = vpow2.f32 %v921_v47  ;;  %v1527_v47 = vld [vmem:[#allocation5 + $0x8] sm:$0xff] }
 0x352   : > { %v1653_v48 = vpop.eup %1652 }
 0x353   : > { %v931_v49 = vsel %vm804_vm6, %v1653_v48, 0.0 }
 0x354   : > { %932 = vadd.xlane.f32.xlu0 %v931_v49 }
 0x355   : > { %v927_v50 = vpop.xlane.xlu0 %926 }
 0x356   : > { %1654 = vrcp.f32 %v927_v50 }
 0x35c   : > { %v1655_v51 = vpop.eup %1654 }
 0x35d   : > { %v941_v55 = vmul.f32 %v1655_v51, %v1647_v32  ;;  %v1535_v51 = vld [vmem:[%s2223_s15 + $0x38] sm:$0xff] }
 0x35f   : > { %v1618_v52 = vpop.permute.xlu1 %1617 }
 0x360   : > { %v1619_v53 = vunpack.i.l.bf16 %v1618_v52  ;;  %v1620_v54 = vunpack.i.h.bf16 %v1618_v52 }
 0x362   : > { %966 = vmatpush.msra.mxu2 %v1619_v53  ;;  %992 = vmatpush.msra.mxu3 %v1620_v54 }
 0x363   : > { %1469 = vmatmul.msk.f32.vlgmr.msra.gmra.mxu2 %vm804_vm6, %v941_v55  ;;  %v1533_v55 = vld [vmem:[%s2223_s15 + $0x28] sm:$0xff] }
 0x364   : > { %1071 = vmatpush.bf16.msrb.mxu2 %v1062_v61  ;;  %1090 = vmatpush.bf16.msrb.mxu3 %v1081_v12  ;;  %v1528_v12 = vld [vmem:[%s2223_s15] sm:$0xff] }
 0x368   : > { %1622 = vrot.lane.b32.xlu0 %v1621_v56, %s1821_s14  ;;  %1212 = vmatpush.bf16.msra.mxu2 %v1527_v47  ;;  %s1440_s14 = sshll.u32 %s2005_s17, 3 }
 0x369   : > { %s626_s21 = scalar_lea.vmem [#allocation7], %s1440_s14  ;;  %s1746_s14 = scalar_lea.hbm %s2254_s16, 16 }
 0x36a   : > { %s1318_s0 = sshll.u32 %s626_s21, 4  ;;  %s1319_s0 = int_to_ptr.vmem [resolvable:$true] %s1318_s0 }
 0x3a9   : > { %v930_v57 = vpop.xlane.xlu2 %929 }
 0x3aa   : > { %1656 = vrcp.f32 %v930_v57 }
 0x3b0   : > { %v1657_v58 = vpop.eup %1656 }
 0x3b1   : > { %v942_v59 = vmul.f32 %v1657_v58, %v1649_v38  ;;  %v1532_v58 = vld [vmem:[%s2223_s15 + $0x20] sm:$0xff] }
 0x3b3   : > { %1470 = vmatmul.msk.f32.vlgmr.msra.gmra.mxu3 %vm804_vm6, %v942_v59 }
 0x3b4   : > { %1289 = vmatpush.bf16.msra.mxu3 %v1535_v51 }
 0x3b9   : > { %v936_v62 = vpop.xlane.xlu2 %935 }
 0x3ba   : > { %1658 = vrcp.f32 %v936_v62 }
 0x3c0   : > { %v1659_v0 = vpop.eup %1658 }
 0x3c1   : > { %v944_v6 = vmul.f32 %v1659_v0, %v1651_v43 }
 0x3c7   : > { %v933_v63 = vpop.xlane.xlu0 %932 }
 0x3c8   : > { %1660 = vrcp.f32 %v933_v63  ;;  %v1531_v63 = vld [vmem:[%s2223_s15 + $0x18] sm:$0xff] }
 0x3ce   : > { %v1661_v1 = vpop.eup %1660 }
 0x3cf   : > { %v943_v7 = vmul.f32 %v1661_v1, %v1653_v48  ;;  %v1526_v48 = vld [vmem:[#allocation5] sm:$0xff]  ;;  %v1530_v1 = vld [vmem:[%s2223_s15 + $0x10] sm:$0xff] }
 0x3d0   : > { %1213 = vmatpush.bf16.msra.mxu2 %v1526_v48 }
 0x3da   : > { %v1623_v3 = vpop.permute.xlu0 %1622 }
 0x3db   : > { %v1625_v4 = vunpack.i.h.bf16 %v1623_v3  ;;  %v1624_v5 = vunpack.i.l.bf16 %v1623_v3  ;;  %v1632_v3 = vld [vmem:[%s2250_s1] ss:$0 sm:$0xff]  ;;  %s1519_s1 = sshll.u32 %s1804_s27, 3  ;;  %s1305_s27 = scalar_lea.sflag [#allocation4], %s2005_s17 }
 0x3dc   : > { %s1316_s20 = scalar_lea.hbm %s2254_s16, %s1519_s1 }
 0x3dd   : > { %1018 = vmatpush.msra.mxu0 %v1624_v5  ;;  %1044 = vmatpush.msra.mxu1 %v1625_v4 }
 0x3de   : > { %1471 = vmatmul.msk.f32.vlgmr.msra.gmra.mxu0 %vm804_vm6, %v943_v7  ;;  %1472 = vmatmul.msk.f32.vlgmr.msra.gmra.mxu1 %vm804_vm6, %v944_v6  ;;  %v1633_v6 = vld [vmem:[%s2251_s30] ss:$0 sm:$0xff]  ;;  %s2253_s30 = sld [smem:[#allocation20_spill]] }
 0x3df   : > { %1109 = vmatpush.bf16.msrb.mxu0 %v1100_v17  ;;  %1128 = vmatpush.bf16.msrb.mxu1 %v1119_v18 }
 0x3e6   : > { %v968_v8 = vpop.f32.mrf.mxu2 }
 0x3e7   : > { %v1049_v9 = vpack.c.bf16 %v968_v8, %v968_v8 }
 0x3e9   : > { %1473 = vmatmul.msk.bf16.vlgmr.msrb.gmra.mxu2 %vm804_vm6, %v1049_v9 }
 0x436   : > { %v994_v13 = vpop.f32.mrf.mxu3 }
 0x437   : > { %v1050_v14 = vpack.c.bf16 %v994_v13, %v994_v13  ;;  %v1634_v13 = vld [vmem:[%s2252_s22] ss:$0 sm:$0xff]  ;;  %s1320_s22 = sshll.u32 %s1316_s20, 4  ;;  %s1321_s22 = int_to_ptr.hbm [resolvable:$true] %s1320_s22 }
 0x438   : > { %s1740_s2 = sshra.s32 %s1321_s22, 4  ;;  %s1741_s2 = int_to_ptr.hbm [resolvable:$true] %s1740_s2 }
 0x439   : > { %1474 = vmatmul.msk.bf16.vlgmr.msrb.gmra.mxu3 %vm804_vm6, %v1050_v14  ;;  %s1742_s19 = scalar_lea.hbm %s1741_s2, 8  ;;  %p1747_p11 = scmp.lt.s32.totalorder %s1741_s2, %s2254_s16 }
 0x43a   : > { %p1743_p1 = scmp.ne.s32.totalorder %s1741_s2, %s1742_s19  ;;  %p1748_p12 = scmp.lt.s32.totalorder %s1746_s14, %s1742_s19 }
 0x43c   : > { %p1744_p9 = pnand %p1743_p1, %p1983_p4  ;;  %p1749_p13 = por %p1748_p12, %p1747_p11 }
 0x43e   : > { %p1745_p10 = pneg %p1744_p9 }
 0x440   : > { %p1750_p0 = pnand %p1749_p13, %p1745_p10 }
 0x45b   : > { %v1020_v19 = vpop.f32.mrf.mxu0  ;;  %v1046_v20 = vpop.f32.mrf.mxu1 }
 0x45c   : > { %v1051_v21 = vpack.c.bf16 %v1020_v19, %v1020_v19  ;;  %v1052_v22 = vpack.c.bf16 %v1046_v20, %v1046_v20  ;;  %v1635_v19 = vld [vmem:[%s2253_s30] ss:$0 sm:$0xff] }
 0x45e   : > { %1475 = vmatmul.msk.bf16.vlgmr.msrb.gmra.mxu0 %vm804_vm6, %v1051_v21  ;;  %1476 = vmatmul.msk.bf16.vlgmr.msrb.gmra.mxu1 %vm804_vm6, %v1052_v22 }
 0x46c   : > { %v1073_v23 = vpop.f32.mrf.mxu2 }
 0x46d   : > { %v1134_v28 = vsel %vm644_vm0, %v1073_v23, 0.0 }
 0x474   : > { %v1075_v24 = vpop.f32.mrf.mxu2 }
 0x4bc   : > { %v1092_v25 = vpop.f32.mrf.mxu3 }
 0x4bd   : > { %v1135_v27 = vsel %vm644_vm0, %v1092_v25, 0.0 }
 0x4be   : > { %v1136_v29 = vadd.f32 %v1135_v27, %v1134_v28 }
 0x4c4   : > { %v1094_v26 = vpop.f32.mrf.mxu3 }
 0x4db   : > { %v1111_v30 = vpop.f32.mrf.mxu0  ;;  %v1130_v31 = vpop.f32.mrf.mxu1 }
 0x4dc   : > { %v1137_v32 = vsel %vm644_vm0, %v1111_v30, 0.0  ;;  %v1139_v35 = vsel %vm644_vm0, %v1130_v31, 0.0 }
 0x4dd   : > { %v1138_v33 = vadd.f32 %v1137_v32, %v1136_v29 }
 0x4df   : > { %v1140_v36 = vadd.f32 %v1139_v35, %v1138_v33 }
 0x4e1   : > { %v1145_v37 = vadd.f32 %v1631_v34, %v1140_v36 }
 0x4e3   : > { %v1113_v38 = vpop.f32.mrf.mxu0  ;;  %v1132_v39 = vpop.f32.mrf.mxu1  ;;  %v2123_v40 = vadd.f32 %v1145_v37, %v2026_v2 }
 0x4e5   : > { %v1149_v41 = vsel %vm644_vm0, %v2123_v40, 0.0 }
 0x4e6   : > { %1150 = vadd.xlane.f32.xlu2 %v1149_v41 }
 0x559   : > { %v1151_v42 = vpop.xlane.xlu2 %1150 }
 0x55a   : > { %v1152_v43 = vmul.f32 %v1151_v42, %v2030_v10  ;;  %v1534_v10 = vld [vmem:[%s2223_s15 + $0x30] sm:$0xff] }
 0x55b   : > { %1290 = vmatpush.bf16.msra.mxu3 %v1534_v10 }
 0x55c   : > { %v1153_v44 = vsub.f32 %v2123_v40, %v1152_v43 }
 0x55e   : > { %v1154_v45 = vmul.f32 %v1153_v44, %v1153_v44 }
 0x55f   : > { %1291 = vmatpush.bf16.msra.mxu3 %v1533_v55 }
 0x560   : > { %v1155_v46 = vsel %vm644_vm0, %v1154_v45, 0.0 }
 0x561   : > { %1156 = vadd.xlane.f32.xlu2 %v1155_v46 }
 0x563   : > { %1292 = vmatpush.bf16.msra.mxu3 %v1532_v58 }
 0x567   : > { %1293 = vmatpush.bf16.msra.mxu3 %v1531_v63 }
 0x56b   : > { %1294 = vmatpush.bf16.msra.mxu3 %v1530_v1 }
 0x56f   : > { %1295 = vmatpush.bf16.msra.mxu3 %v1529_v11 }
 0x573   : > { %1296 = vmatpush.bf16.msra.mxu3 %v1528_v12 }
 0x5d4   : > { %v1157_v49 = vpop.xlane.xlu2 %1156 }
 0x5d5   : > { %v1158_v2 = vmul.f32 0.032258064, %v1157_v49 }
 0x5d7   : > { %1662 = vrsqrt.f32 %v1158_v2  ;;  %vm1166_vm8 = vcmp.eq.f32.partialorder %v1158_v2, inf  ;;  %v1169_v60 = vand.u32 2147483648, %v1158_v2  ;;  %vm1168_vm9 = vcmp.eq.f32.partialorder %v1158_v2, 0.0 }
 0x5dd   : > { %v1663_v50 = vpop.eup %1662 }
 0x5de   : > { %v1160_v52 = vmul.f32 %v1663_v50, %v1158_v2 }
 0x5e0   : > { %v1161_v53 = vmul.f32 %v1663_v50, %v1160_v52 }
 0x5e2   : > { %v1162_v54 = vmul.f32 0.5, %v1161_v53 }
 0x5e4   : > { %v1163_v56 = vsub.f32 1.5, %v1162_v54 }
 0x5e6   : > { %v1164_v57 = vmul.f32 %v1663_v50, %v1163_v56 }
 0x5e8   : > { %v1165_v59 = vmul.f32 %v1164_v57, %v1158_v2 }
 0x5ea   : > { %v1167_v61 = vsel %vm1166_vm8, %v1158_v2, %v1165_v59 }
 0x5eb   : > { %v1170_v62 = vsel %vm1168_vm9, %v1169_v60, %v1167_v61 }
 0x5ec   : > { %v1171_v0 = vadd.f32 1e-06, %v1170_v62 }
 0x5ee   : > { %1664 = vrcp.f32 %v1171_v0 }
 0x5f4   : > { %v1665_v4 = vpop.eup %1664 }
 0x5f5   : > { %v1173_v5 = vmul.f32 %v1665_v4, %v1153_v44 }
 0x5f7   : > { %v1177_v7 = vmul.f32 %v1632_v3, %v1173_v5 }
 0x5f9   : > { %v1181_v8 = vadd.f32 %v1633_v6, %v1177_v7 }
 0x5fb   : > { %v1182_v9 = vpack.c.bf16 %v1181_v8, %v1181_v8 }
 0x5fd   : > { %1485 = vmatmul.msk.bf16.vlgmr.msra.gmra.mxu2 %vm644_vm0, %v1182_v9 }
 0x680   : > { %v1215_v14 = vpop.f32.mrf.mxu2 }
 0x681   : > { %v1216_v15 = vadd.f32 %v1634_v13, %v1215_v14 }
 0x683   : > { %v1219_v16 = vmax.f32 %v1216_v15, 0.0 }
 0x685   : > { %v1220_v17 = vpack.c.bf16 %v1219_v16, %v1219_v16 }
 0x687   : > { %1297 = vmatmul.bf16.vlgmr.msra.gmra.mxu3 %v1220_v17 }
 0x688   : > { %v1217_v18 = vpop.f32.mrf.mxu2 }
 0x70a   : > { %v1298_v20 = vpop.f32.mrf.mxu3 }
 0x70b   : > { %v1299_v21 = vadd.f32 %v1635_v19, %v1298_v20 }
 0x70d   : > { %v1302_v22 = vadd.f32 %v1299_v21, %v2123_v40 }
 0x70f   : > { %1303 = vst.msk [vmem:[%s626_s21] sm:$0xff] %vm644_vm0, %v1302_v22 }
 0x710   : > { %1753 = shalt.err (!%p1750_p0)
}
 0x711   : > { %1542 = dma.vmem_to_hbm [thread:$0]  (%p1983_p4), %s1319_s0, 128, %s1321_s22, %s1305_s27  }
 0x712   : > { %v1300_v23 = vpop.f32.mrf.mxu3 }
 0x713 PF: > { %s2255_s17 = sld [smem:[#allocation11_spill]]  ;;  %p1553_p2 = pnand %p1437_p6, %p1991_p7 }
 0x715   : > { %p1554_p5 = pneg %p1553_p2 }
 0x719   : > { %s1332_s13 = sand.u32 1, %s2255_s17  }
 0x71a   : > { %s1333_s20 = scalar_lea.sflag [#allocation4], %s1332_s13 }
 0x71b   : > { %1787 = dma.done.wait (%p1554_p5), %s1333_s20, 128  }
 0x71c   : > { %1789 = vsyncadd (%p1554_p5), %s1333_s20, 4294967168  ;;  %s34_s29 = sadd.s32 1, %s1812_s29   ;;  %s2256_s2 = sld [smem:[#allocation12_spill]] }
 0x71d   : > { %p31_p8 = scmp.ge.s32.totalorder %s34_s29, 4   ;;  %s2257_s24 = smov %s1796_s25 }
 0x71e   : > { %s2258_s25 = smov %s1800_s26  ;;  %s2259_s26 = smov %s1989_s18 }
 0x71f   : > { %s2260_s27 = smov %s1808_s28  ;;  %33 = sbr.rel (!%p31_p8) target bundleno = 17 (0x11), region = 143 }
 0x722   : > { %s2261_s28 = smov %s2256_s2 }
 0x724   :  { %1339 = vsyncpa [#allocation3], 1 }
 0x725   :  { %1341 = vsyncpa [#allocation3 + $0x1], 1 }
 0x726   :  { %1342 = vsyncpa [#allocation6], 1 }
 0x727   :  { %1343 = vsyncpa [#allocation4], 1 }
 0x728   :  { %1345 = vsyncpa [#allocation4 + $0x1], 1 }

</bundles_post_ra>
